<compile_context>
chip_gen: v7x
topology: tpu7x:2x2x1
jax: 0.10.0
libtpu: 0.0.40
codegen_flags: <defaults>
</compile_context>

<pallas_src>
import functools
import math

import jax
import jax.numpy as jnp
from jax import lax
from jax.experimental import pallas as pl
from jax.experimental.pallas import tpu as pltpu


def _pick_tile(dim, target, align):
    """Largest multiple of `align` that divides `dim` and is <= target.

    Falls back to the full dimension (always a legal block size) if `dim` is
    already <= target or no aligned divisor exists.  Keeps every BlockSpec
    exact (no ragged tails) and (8,128)-legal.
    """
    if dim <= target:
        return dim
    t = (target // align) * align
    while t >= align:
        if dim % t == 0:
            return t
        t -= align
    return dim  # no aligned divisor: use the full dim (legal, just one block)


# ---------------------------------------------------------------------------
# M/N/K-tiled Linear:  y = x @ W + b     (W stored (d_in, d_out))
# ---------------------------------------------------------------------------
def _linear_kernel(x_ref, w_ref, b_ref, o_ref, acc_ref, *, compute_dtype):
    k = pl.program_id(2)

    @pl.when(k == 0)
    def _():
        acc_ref[...] = jnp.zeros_like(acc_ref)

    x = x_ref[...]
    w = w_ref[...]
    if compute_dtype is not None:            # bf16 MXU feed on v6e/v7x
        x = x.astype(compute_dtype)
        w = w.astype(compute_dtype)
    acc_ref[...] += jnp.dot(x, w, preferred_element_type=jnp.float32)

    @pl.when(k == pl.num_programs(2) - 1)
    def _():
        o_ref[...] = (acc_ref[...] + b_ref[...].astype(jnp.float32)).astype(o_ref.dtype)


def _linear(x2d, w, b, *, compute_dtype=None,
            tm_target=512, tn_target=512, tk_target=512):
    M, K = x2d.shape
    N = w.shape[1]
    tm = _pick_tile(M, tm_target, 8)      # sublane-aligned row tile
    tn = _pick_tile(N, tn_target, 128)    # lane/MXU-aligned output columns
    tk = _pick_tile(K, tk_target, 128)    # lane/MXU-aligned contraction tile
    b2d = b.reshape(1, N)

    kern = functools.partial(_linear_kernel, compute_dtype=compute_dtype)
    return pl.pallas_call(
        kern,
        out_shape=jax.ShapeDtypeStruct((M, N), x2d.dtype),
        grid_spec=pltpu.PrefetchScalarGridSpec(
            num_scalar_prefetch=0,
            grid=(M // tm, N // tn, K // tk),
            in_specs=[
                pl.BlockSpec((tm, tk), lambda i, j, k: (i, k)),   # x tile
                pl.BlockSpec((tk, tn), lambda i, j, k: (k, j)),   # W tile
                pl.BlockSpec((1, tn), lambda i, j, k: (0, j)),    # bias tile
            ],
            out_specs=pl.BlockSpec((tm, tn), lambda i, j, k: (i, j)),
            scratch_shapes=[pltpu.VMEM((tm, tn), jnp.float32)],   # f32 accumulator
        ),
        compiler_params=pltpu.CompilerParams(
            dimension_semantics=("parallel", "parallel", "arbitrary"),
            vmem_limit_bytes=64 * 1024 * 1024),
    )(x2d, w, b2d)


# ---------------------------------------------------------------------------
# Flash attention with the head split fused into the kernel.
#
# qkv3d : (B, S, 3*D) projection output in the PyTorch column order, i.e. head
#         h occupies columns [h*3*hd, (h+1)*3*hd) as [q | k | v].
# out   : (B, H, S, hd)   (PyTorch's buggy reshape to (B,S,D) is then a free
#         row-major regroup — no head permute, matching the module.)
#
# Grid = (B, n_q_tiles, n_kv_tiles); kv axis last + "arbitrary" (reduction).
# The q/kv input blocks take the full 3*D last dim (always layout-legal, even
# for tiny d_model / head_dim); per-head columns are static VMEM slices, so
# the only redundancy vs. a perfect split is ~1.5x on the streamed KV bytes —
# far cheaper than the old HBM transpose + three strided slices.
# ---------------------------------------------------------------------------
def _flash_attention_kernel(q_ref, kv_ref, o_ref, m_ref, l_ref, acc_ref, *,
                            num_heads, head_dim, scale, compute_dtype):
    kvi = pl.program_id(2)

    @pl.when(kvi == 0)
    def _():
        m_ref[...] = jnp.full_like(m_ref, -jnp.inf)
        l_ref[...] = jnp.zeros_like(l_ref)
        acc_ref[...] = jnp.zeros_like(acc_ref)

    hd = head_dim
    for h in range(num_heads):                       # static unroll, static slices
        base = h * 3 * hd
        q = q_ref[0, :, base:base + hd]              # (tq, hd)
        k = kv_ref[0, :, base + hd:base + 2 * hd]    # (tkv, hd)
        v = kv_ref[0, :, base + 2 * hd:base + 3 * hd]
        if compute_dtype is not None:                # narrow MXU feed (optional)
            q = q.astype(compute_dtype)
            k = k.astype(compute_dtype)
            v = v.astype(compute_dtype)
        q = q * jnp.asarray(scale, q.dtype)          # scale q (tq*hd), not scores

        # scores (tq, tkv) on the MXU, f32 accumulation
        s = lax.dot_general(q, k, (((1,), (1,)), ((), ())),
                            preferred_element_type=jnp.float32)

        # online (flash) softmax, all stats in f32
        m_prev = m_ref[h]                            # (tq, 1)
        l_prev = l_ref[h]
        m_new = jnp.maximum(m_prev, jnp.max(s, axis=-1, keepdims=True))
        alpha = jnp.exp(m_prev - m_new)              # rescale of old stats
        p = jnp.exp(s - m_new)                       # (tq, tkv) f32
        l_ref[h] = alpha * l_prev + jnp.sum(p, axis=-1, keepdims=True)
        pv = lax.dot_general(p.astype(v.dtype), v, (((1,), (0,)), ((), ())),
                             preferred_element_type=jnp.float32)   # (tq, hd)
        acc_ref[h] = alpha * acc_ref[h] + pv
        m_ref[h] = m_new

    @pl.when(kvi == pl.num_programs(2) - 1)
    def _():
        # Deferred normalization: one reciprocal on the EUP, applied to the
        # (H, tq, hd) accumulator instead of dividing (tq, S) probabilities.
        inv = pl.reciprocal(l_ref[...], approx=True)
        # NOTE: output last dim is hd (<128 typical) by the module's own
        # layout, so stores are masked vst; unavoidable without changing the
        # (intentionally replicated) PyTorch reshape semantics.
        o_ref[0] = (acc_ref[...] * inv).astype(o_ref.dtype)


def _attention(qkv3d, num_heads, head_dim, *, compute_dtype=None,
               tq_target=256, tkv_target=512):
    B, S, threeD = qkv3d.shape
    H, hd = num_heads, head_dim
    tq = _pick_tile(S, tq_target, 8)
    tkv = _pick_tile(S, tkv_target, 8)

    kern = functools.partial(
        _flash_attention_kernel, num_heads=H, head_dim=hd,
        scale=1.0 / math.sqrt(hd), compute_dtype=compute_dtype)

    return pl.pallas_call(
        kern,
        out_shape=jax.ShapeDtypeStruct((B, H, S, hd), qkv3d.dtype),
        grid_spec=pltpu.PrefetchScalarGridSpec(
            num_scalar_prefetch=0,
            grid=(B, S // tq, S // tkv),
            in_specs=[
                # q rows: re-DMA'd only when (b, qi) changes
                pl.BlockSpec((1, tq, threeD), lambda b, qi, kvi: (b, qi, 0)),
                # kv rows: streamed along the (last, "arbitrary") kv axis
                pl.BlockSpec((1, tkv, threeD), lambda b, qi, kvi: (b, kvi, 0)),
            ],
            out_specs=pl.BlockSpec((1, H, tq, hd),
                                   lambda b, qi, kvi: (b, 0, qi, 0)),
            scratch_shapes=[
                pltpu.VMEM((H, tq, 1), jnp.float32),    # running max m
                pltpu.VMEM((H, tq, 1), jnp.float32),    # running denom l
                pltpu.VMEM((H, tq, hd), jnp.float32),   # running numerator acc
            ],
        ),
        compiler_params=pltpu.CompilerParams(
            dimension_semantics=("parallel", "parallel", "arbitrary"),
            vmem_limit_bytes=64 * 1024 * 1024),
    )(qkv3d, qkv3d)


# ---------------------------------------------------------------------------
# Full MultiHeadAttention forward.
# ---------------------------------------------------------------------------
def multi_head_attention(x, w_qkv, b_qkv, w_o, b_o, num_heads, *,
                         compute_dtype=None):
    B, S, D = x.shape
    hd = D // num_heads

    # 1) fused QKV projection: (B*S, D) @ (D, 3D) + b, K/N tiled, f32 acc.
    qkv = _linear(x.reshape(B * S, D), w_qkv, b_qkv,
                  compute_dtype=compute_dtype)                  # (B*S, 3D)

    # 2+3) attention with the head split fused into the kernel's BlockSpecs /
    #      VMEM slices — the reshape below is a free row-major regroup, there
    #      is NO HBM transpose or strided slicing between the two kernels.
    qkv3d = qkv.reshape(B, S, 3 * D)
    vals = _attention(qkv3d, num_heads, hd,
                      compute_dtype=compute_dtype)              # (B, H, S, hd)

    # 4) PyTorch reshapes (B,H,S,hd) -> (B,S,H*hd) WITHOUT permuting heads
    #    back; the identical raw row-major regroup is (B,H,S,hd)->(B*S, D).
    out2d = _linear(vals.reshape(B * S, D), w_o, b_o,
                    compute_dtype=compute_dtype)                # (B*S, D)
    return out2d.reshape(B, S, D)


# ---------------------------------------------------------------------------
# Parameter init mimicking nn.Linear default: U(-1/sqrt(fan_in), 1/sqrt(fan_in)).
# Weights stored transposed (in, out) so kernels compute x @ W directly.
# ---------------------------------------------------------------------------
def _init_params(key, d_model, dtype=jnp.float32):
    k1, k2, k3, k4 = jax.random.split(key, 4)
    lim = 1.0 / (d_model ** 0.5)
    w_qkv = jax.random.uniform(k1, (d_model, 3 * d_model), dtype, -lim, lim)
    b_qkv = jax.random.uniform(k2, (3 * d_model,), dtype, -lim, lim)
    w_o = jax.random.uniform(k3, (d_model, d_model), dtype, -lim, lim)
    b_o = jax.random.uniform(k4, (d_model,), dtype, -lim, lim)
    return w_qkv, b_qkv, w_o, b_o


def _mha_ref(x, w_qkv, b_qkv, w_o, b_o, num_heads):
    """Pure-JAX reference mirroring the PyTorch module line by line."""
    B, S, D = x.shape
    hd = D // num_heads
    qkv = x @ w_qkv + b_qkv
    qkv = qkv.reshape(B, S, num_heads, 3 * hd).transpose(0, 2, 1, 3)
    q, k, v = qkv[..., :hd], qkv[..., hd:2 * hd], qkv[..., 2 * hd:]
    s = jnp.einsum("bhqd,bhkd->bhqk", q, k) / math.sqrt(hd)
    a = jax.nn.softmax(s, axis=-1)
    vals = jnp.einsum("bhqk,bhkd->bhqd", a, v)      # (B,H,S,hd)
    vals = vals.reshape(B, S, num_heads * hd)       # same raw reshape as PyTorch
    return vals @ w_o + b_o


if __name__ == "__main__":
    batch, seq, d_model, num_heads = 2, 8, 32, 4

    key = jax.random.PRNGKey(0)
    kx, kp = jax.random.split(key)
    x = jax.random.normal(kx, (batch, seq, d_model), dtype=jnp.float32)
    w_qkv, b_qkv, w_o, b_o = _init_params(kp, d_model)

    fwd = jax.jit(functools.partial(multi_head_attention, num_heads=num_heads))
    out = jax.block_until_ready(fwd(x, w_qkv, b_qkv, w_o, b_o))

    ref = _mha_ref(x, w_qkv, b_qkv, w_o, b_o, num_heads)
    assert out.shape == (batch, seq, d_model)
    # tolerance absorbs the approximate EUP reciprocal in the flash finalize
    assert jnp.allclose(out, ref, atol=5e-3, rtol=5e-3), (
        float(jnp.max(jnp.abs(out - ref))))

    print("KERNEL_OK")
</pallas_src>

<mosaic_0001>
module attributes {stable_mosaic.version = 11 : i64} {
  func.func @_linear_kernel(%arg0: i32, %arg1: i32, %arg2: i32, %arg3: memref<16x32xf32, #tpu.memory_space<vmem>>, %arg4: memref<32x32xf32, #tpu.memory_space<vmem>>, %arg5: memref<1x32xf32, #tpu.memory_space<vmem>>, %arg6: memref<16x32xf32, #tpu.memory_space<vmem>>, %arg7: memref<16x32xf32, #tpu.memory_space<vmem>>) attributes {dimension_semantics = [#tpu.dimension_semantics<parallel>, #tpu.dimension_semantics<parallel>, #tpu.dimension_semantics<arbitrary>], iteration_bounds = array<i64: 1, 1, 1>, scalar_prefetch = 0 : i64, scratch_operands = 1 : i64, tpu.core_type = #tpu.core_type<tc>, window_params = [{transform_indices = @transform_0, window_bounds = array<i64: 16, 32>}, {transform_indices = @transform_1, window_bounds = array<i64: 32, 32>}, {transform_indices = @transform_2, window_bounds = array<i64: 1, 32>}, {transform_indices = @transform_3, window_bounds = array<i64: 16, 32>}]} {
    %c0_i32 = arith.constant 0 : i32
    %0 = arith.cmpi eq, %arg2, %c0_i32 : i32
    %1 = arith.extui %0 : i1 to i32
    %c0_i32_0 = arith.constant 0 : i32
    %2 = arith.cmpi ne, %1, %c0_i32_0 : i32
    scf.if %2 {
      %cst_10 = arith.constant 0.000000e+00 : f32
      %12 = vector.broadcast %cst_10 : f32 to vector<16x32xf32>
      %c0_11 = arith.constant 0 : index
      %c0_12 = arith.constant 0 : index
      %13 = vector.load %arg7[%c0_11, %c0_12] : memref<16x32xf32, #tpu.memory_space<vmem>>, vector<16x32xf32>
      tpu.vector_store %arg7[%c0_11, %c0_12], %12 {strides = array<i32>} : memref<16x32xf32, #tpu.memory_space<vmem>>, vector<16x32xf32>,
    } else {
    }
    %c0 = arith.constant 0 : index
    %c0_1 = arith.constant 0 : index
    %3 = vector.load %arg3[%c0, %c0_1] : memref<16x32xf32, #tpu.memory_space<vmem>>, vector<16x32xf32>
    %c0_2 = arith.constant 0 : index
    %c0_3 = arith.constant 0 : index
    %4 = vector.load %arg4[%c0_2, %c0_3] : memref<32x32xf32, #tpu.memory_space<vmem>>, vector<32x32xf32>
    %c0_4 = arith.constant 0 : index
    %c0_5 = arith.constant 0 : index
    %5 = vector.load %arg7[%c0_4, %c0_5] : memref<16x32xf32, #tpu.memory_space<vmem>>, vector<16x32xf32>
    %cst = arith.constant dense<0.000000e+00> : vector<16x32xf32>
    %6 = tpu.matmul %3, %4, %cst {dimension_numbers = #tpu.dot_dimension_numbers<[1], [0], [0], [1], [0, 0, 1, 1], [], []>} : vector<16x32xf32>, vector<32x32xf32>, vector<16x32xf32> -> vector<16x32xf32>
    %7 = arith.addf %5, %6 : vector<16x32xf32>
    %c0_6 = arith.constant 0 : index
    %c0_7 = arith.constant 0 : index
    %8 = vector.load %arg7[%c0_6, %c0_7] : memref<16x32xf32, #tpu.memory_space<vmem>>, vector<16x32xf32>
    tpu.vector_store %arg7[%c0_6, %c0_7], %7 {strides = array<i32>} : memref<16x32xf32, #tpu.memory_space<vmem>>, vector<16x32xf32>,
    %c0_i32_8 = arith.constant 0 : i32
    %9 = arith.cmpi eq, %arg2, %c0_i32_8 : i32
    %10 = arith.extui %9 : i1 to i32
    %c0_i32_9 = arith.constant 0 : i32
    %11 = arith.cmpi ne, %10, %c0_i32_9 : i32
    scf.if %11 {
      %c0_10 = arith.constant 0 : index
      %c0_11 = arith.constant 0 : index
      %12 = vector.load %arg7[%c0_10, %c0_11] : memref<16x32xf32, #tpu.memory_space<vmem>>, vector<16x32xf32>
      %c0_12 = arith.constant 0 : index
      %c0_13 = arith.constant 0 : index
      %13 = vector.load %arg5[%c0_12, %c0_13] : memref<1x32xf32, #tpu.memory_space<vmem>>, vector<1x32xf32>
      %14 = vector.broadcast %13 : vector<1x32xf32> to vector<16x32xf32>
      %15 = arith.addf %12, %14 : vector<16x32xf32>
      %c0_14 = arith.constant 0 : index
      %c0_15 = arith.constant 0 : index
      %16 = vector.load %arg6[%c0_14, %c0_15] : memref<16x32xf32, #tpu.memory_space<vmem>>, vector<16x32xf32>
      tpu.vector_store %arg6[%c0_14, %c0_15], %15 {strides = array<i32>} : memref<16x32xf32, #tpu.memory_space<vmem>>, vector<16x32xf32>,
    } else {
    }
    return
  }
  func.func @transform_0(%arg0: i32, %arg1: i32, %arg2: i32) -> (i32, i32) {
    %c0_i32 = arith.constant 0 : i32
    return %arg0, %arg2 : i32, i32
  }
  func.func @transform_1(%arg0: i32, %arg1: i32, %arg2: i32) -> (i32, i32) {
    %c0_i32 = arith.constant 0 : i32
    return %arg2, %arg1 : i32, i32
  }
  func.func @transform_2(%arg0: i32, %arg1: i32, %arg2: i32) -> (i32, i32) {
    %c0_i32 = arith.constant 0 : i32
    %c0_i32_0 = arith.constant 0 : i32
    return %c0_i32, %arg1 : i32, i32
  }
  func.func @transform_3(%arg0: i32, %arg1: i32, %arg2: i32) -> (i32, i32) {
    %c0_i32 = arith.constant 0 : i32
    return %arg0, %arg1 : i32, i32
  }
}

module attributes {stable_mosaic.version = 11 : i64} {
  func.func @_linear_kernel(%arg0: i32, %arg1: i32, %arg2: i32, %arg3: memref<16x32xf32, #tpu.memory_space<vmem>>, %arg4: memref<32x96xf32, #tpu.memory_space<vmem>>, %arg5: memref<1x96xf32, #tpu.memory_space<vmem>>, %arg6: memref<16x96xf32, #tpu.memory_space<vmem>>, %arg7: memref<16x96xf32, #tpu.memory_space<vmem>>) attributes {dimension_semantics = [#tpu.dimension_semantics<parallel>, #tpu.dimension_semantics<parallel>, #tpu.dimension_semantics<arbitrary>], iteration_bounds = array<i64: 1, 1, 1>, scalar_prefetch = 0 : i64, scratch_operands = 1 : i64, tpu.core_type = #tpu.core_type<tc>, window_params = [{transform_indices = @transform_0, window_bounds = array<i64: 16, 32>}, {transform_indices = @transform_1, window_bounds = array<i64: 32, 96>}, {transform_indices = @transform_2, window_bounds = array<i64: 1, 96>}, {transform_indices = @transform_3, window_bounds = array<i64: 16, 96>}]} {
    %c0_i32 = arith.constant 0 : i32
    %0 = arith.cmpi eq, %arg2, %c0_i32 : i32
    %1 = arith.extui %0 : i1 to i32
    %c0_i32_0 = arith.constant 0 : i32
    %2 = arith.cmpi ne, %1, %c0_i32_0 : i32
    scf.if %2 {
      %cst_10 = arith.constant 0.000000e+00 : f32
      %12 = vector.broadcast %cst_10 : f32 to vector<16x96xf32>
      %c0_11 = arith.constant 0 : index
      %c0_12 = arith.constant 0 : index
      %13 = vector.load %arg7[%c0_11, %c0_12] : memref<16x96xf32, #tpu.memory_space<vmem>>, vector<16x96xf32>
      tpu.vector_store %arg7[%c0_11, %c0_12], %12 {strides = array<i32>} : memref<16x96xf32, #tpu.memory_space<vmem>>, vector<16x96xf32>,
    } else {
    }
    %c0 = arith.constant 0 : index
    %c0_1 = arith.constant 0 : index
    %3 = vector.load %arg3[%c0, %c0_1] : memref<16x32xf32, #tpu.memory_space<vmem>>, vector<16x32xf32>
    %c0_2 = arith.constant 0 : index
    %c0_3 = arith.constant 0 : index
    %4 = vector.load %arg4[%c0_2, %c0_3] : memref<32x96xf32, #tpu.memory_space<vmem>>, vector<32x96xf32>
    %c0_4 = arith.constant 0 : index
    %c0_5 = arith.constant 0 : index
    %5 = vector.load %arg7[%c0_4, %c0_5] : memref<16x96xf32, #tpu.memory_space<vmem>>, vector<16x96xf32>
    %cst = arith.constant dense<0.000000e+00> : vector<16x96xf32>
    %6 = tpu.matmul %3, %4, %cst {dimension_numbers = #tpu.dot_dimension_numbers<[1], [0], [0], [1], [0, 0, 1, 1], [], []>} : vector<16x32xf32>, vector<32x96xf32>, vector<16x96xf32> -> vector<16x96xf32>
    %7 = arith.addf %5, %6 : vector<16x96xf32>
    %c0_6 = arith.constant 0 : index
    %c0_7 = arith.constant 0 : index
    %8 = vector.load %arg7[%c0_6, %c0_7] : memref<16x96xf32, #tpu.memory_space<vmem>>, vector<16x96xf32>
    tpu.vector_store %arg7[%c0_6, %c0_7], %7 {strides = array<i32>} : memref<16x96xf32, #tpu.memory_space<vmem>>, vector<16x96xf32>,
    %c0_i32_8 = arith.constant 0 : i32
    %9 = arith.cmpi eq, %arg2, %c0_i32_8 : i32
    %10 = arith.extui %9 : i1 to i32
    %c0_i32_9 = arith.constant 0 : i32
    %11 = arith.cmpi ne, %10, %c0_i32_9 : i32
    scf.if %11 {
      %c0_10 = arith.constant 0 : index
      %c0_11 = arith.constant 0 : index
      %12 = vector.load %arg7[%c0_10, %c0_11] : memref<16x96xf32, #tpu.memory_space<vmem>>, vector<16x96xf32>
      %c0_12 = arith.constant 0 : index
      %c0_13 = arith.constant 0 : index
      %13 = vector.load %arg5[%c0_12, %c0_13] : memref<1x96xf32, #tpu.memory_space<vmem>>, vector<1x96xf32>
      %14 = vector.broadcast %13 : vector<1x96xf32> to vector<16x96xf32>
      %15 = arith.addf %12, %14 : vector<16x96xf32>
      %c0_14 = arith.constant 0 : index
      %c0_15 = arith.constant 0 : index
      %16 = vector.load %arg6[%c0_14, %c0_15] : memref<16x96xf32, #tpu.memory_space<vmem>>, vector<16x96xf32>
      tpu.vector_store %arg6[%c0_14, %c0_15], %15 {strides = array<i32>} : memref<16x96xf32, #tpu.memory_space<vmem>>, vector<16x96xf32>,
    } else {
    }
    return
  }
  func.func @transform_0(%arg0: i32, %arg1: i32, %arg2: i32) -> (i32, i32) {
    %c0_i32 = arith.constant 0 : i32
    return %arg0, %arg2 : i32, i32
  }
  func.func @transform_1(%arg0: i32, %arg1: i32, %arg2: i32) -> (i32, i32) {
    %c0_i32 = arith.constant 0 : i32
    return %arg2, %arg1 : i32, i32
  }
  func.func @transform_2(%arg0: i32, %arg1: i32, %arg2: i32) -> (i32, i32) {
    %c0_i32 = arith.constant 0 : i32
    %c0_i32_0 = arith.constant 0 : i32
    return %c0_i32, %arg1 : i32, i32
  }
  func.func @transform_3(%arg0: i32, %arg1: i32, %arg2: i32) -> (i32, i32) {
    %c0_i32 = arith.constant 0 : i32
    return %arg0, %arg1 : i32, i32
  }
}

module attributes {stable_mosaic.version = 11 : i64} {
  func.func @_flash_attention_kernel(%arg0: i32, %arg1: i32, %arg2: i32, %arg3: memref<1x8x96xf32, #tpu.memory_space<vmem>>, %arg4: memref<1x8x96xf32, #tpu.memory_space<vmem>>, %arg5: memref<1x4x8x8xf32, #tpu.memory_space<vmem>>, %arg6: memref<4x8x1xf32, #tpu.memory_space<vmem>>, %arg7: memref<4x8x1xf32, #tpu.memory_space<vmem>>, %arg8: memref<4x8x8xf32, #tpu.memory_space<vmem>>) attributes {dimension_semantics = [#tpu.dimension_semantics<parallel>, #tpu.dimension_semantics<parallel>, #tpu.dimension_semantics<arbitrary>], iteration_bounds = array<i64: 2, 1, 1>, scalar_prefetch = 0 : i64, scratch_operands = 3 : i64, tpu.core_type = #tpu.core_type<tc>, window_params = [{transform_indices = @transform_0, window_bounds = array<i64: 1, 8, 96>}, {transform_indices = @transform_1, window_bounds = array<i64: 1, 8, 96>}, {transform_indices = @transform_2, window_bounds = array<i64: 1, 4, 8, 8>}]} {
    %c0_i32 = arith.constant 0 : i32
    %0 = arith.cmpi eq, %arg2, %c0_i32 : i32
    %1 = arith.extui %0 : i1 to i32
    %c0_i32_0 = arith.constant 0 : i32
    %2 = arith.cmpi ne, %1, %c0_i32_0 : i32
    scf.if %2 {
      %cst_115 = arith.constant 0xFF800000 : f32
      %166 = vector.broadcast %cst_115 : f32 to vector<4x8x1xf32>
      %c0_116 = arith.constant 0 : index
      %c0_117 = arith.constant 0 : index
      %c0_118 = arith.constant 0 : index
      %167 = vector.load %arg6[%c0_116, %c0_117, %c0_118] : memref<4x8x1xf32, #tpu.memory_space<vmem>>, vector<4x8x1xf32>
      tpu.vector_store %arg6[%c0_116, %c0_117, %c0_118], %166 {strides = array<i32>} : memref<4x8x1xf32, #tpu.memory_space<vmem>>, vector<4x8x1xf32>,
      %cst_119 = arith.constant 0.000000e+00 : f32
      %168 = vector.broadcast %cst_119 : f32 to vector<4x8x1xf32>
      %c0_120 = arith.constant 0 : index
      %c0_121 = arith.constant 0 : index
      %c0_122 = arith.constant 0 : index
      %169 = vector.load %arg7[%c0_120, %c0_121, %c0_122] : memref<4x8x1xf32, #tpu.memory_space<vmem>>, vector<4x8x1xf32>
      tpu.vector_store %arg7[%c0_120, %c0_121, %c0_122], %168 {strides = array<i32>} : memref<4x8x1xf32, #tpu.memory_space<vmem>>, vector<4x8x1xf32>,
      %cst_123 = arith.constant 0.000000e+00 : f32
      %170 = vector.broadcast %cst_123 : f32 to vector<4x8x8xf32>
      %c0_124 = arith.constant 0 : index
      %c0_125 = arith.constant 0 : index
      %c0_126 = arith.constant 0 : index
      %171 = vector.load %arg8[%c0_124, %c0_125, %c0_126] : memref<4x8x8xf32, #tpu.memory_space<vmem>>, vector<4x8x8xf32>
      tpu.vector_store %arg8[%c0_124, %c0_125, %c0_126], %170 {strides = array<i32>} : memref<4x8x8xf32, #tpu.memory_space<vmem>>, vector<4x8x8xf32>,
    } else {
    }
    %c0 = arith.constant 0 : index
    %c0_1 = arith.constant 0 : index
    %c0_2 = arith.constant 0 : index
    %3 = vector.load %arg3[%c0, %c0_1, %c0_2] : memref<1x8x96xf32, #tpu.memory_space<vmem>>, vector<1x8x8xf32>
    %4 = vector.shape_cast %3 : vector<1x8x8xf32> to vector<8x8xf32>
    %c0_3 = arith.constant 0 : index
    %c0_4 = arith.constant 0 : index
    %c8 = arith.constant 8 : index
    %5 = vector.load %arg4[%c0_3, %c0_4, %c8] : memref<1x8x96xf32, #tpu.memory_space<vmem>>, vector<1x8x8xf32>
    %6 = vector.shape_cast %5 : vector<1x8x8xf32> to vector<8x8xf32>
    %c0_5 = arith.constant 0 : index
    %c0_6 = arith.constant 0 : index
    %c16 = arith.constant 16 : index
    %7 = vector.load %arg4[%c0_5, %c0_6, %c16] : memref<1x8x96xf32, #tpu.memory_space<vmem>>, vector<1x8x8xf32>
    %8 = vector.shape_cast %7 : vector<1x8x8xf32> to vector<8x8xf32>
    %cst = arith.constant 0.353553385 : f32
    %9 = vector.broadcast %cst : f32 to vector<8x8xf32>
    %10 = arith.mulf %4, %9 : vector<8x8xf32>
    %cst_7 = arith.constant dense<0.000000e+00> : vector<8x8xf32>
    %11 = tpu.matmul %10, %6, %cst_7 {dimension_numbers = #tpu.dot_dimension_numbers<[1], [1], [0], [0], [0, 0, 1, 0], [], []>} : vector<8x8xf32>, vector<8x8xf32>, vector<8x8xf32> -> vector<8x8xf32>
    %c0_8 = arith.constant 0 : index
    %c0_9 = arith.constant 0 : index
    %c0_10 = arith.constant 0 : index
    %12 = vector.load %arg6[%c0_8, %c0_9, %c0_10] : memref<4x8x1xf32, #tpu.memory_space<vmem>>, vector<1x8x1xf32>
    %13 = vector.shape_cast %12 : vector<1x8x1xf32> to vector<8x1xf32>
    %c0_11 = arith.constant 0 : index
    %c0_12 = arith.constant 0 : index
    %c0_13 = arith.constant 0 : index
    %14 = vector.load %arg7[%c0_11, %c0_12, %c0_13] : memref<4x8x1xf32, #tpu.memory_space<vmem>>, vector<1x8x1xf32>
    %15 = vector.shape_cast %14 : vector<1x8x1xf32> to vector<8x1xf32>
    %cst_14 = arith.constant dense<0xFF800000> : vector<8xf32>
    %16 = vector.multi_reduction <maximumf>, %11, %cst_14 [1] : vector<8x8xf32> to vector<8xf32>
    %17 = vector.shape_cast %16 : vector<8xf32> to vector<8x1xf32>
    %18 = arith.maximumf %13, %17 : vector<8x1xf32>
    %19 = arith.subf %13, %18 : vector<8x1xf32>
    %20 = math.exp %19 : vector<8x1xf32>
    %21 = vector.broadcast %18 : vector<8x1xf32> to vector<8x8xf32>
    %22 = arith.subf %11, %21 : vector<8x8xf32>
    %23 = math.exp %22 : vector<8x8xf32>
    %24 = arith.mulf %20, %15 : vector<8x1xf32>
    %cst_15 = arith.constant dense<0.000000e+00> : vector<8xf32>
    %25 = vector.multi_reduction <add>, %23, %cst_15 [1] : vector<8x8xf32> to vector<8xf32>
    %26 = vector.shape_cast %25 : vector<8xf32> to vector<8x1xf32>
    %27 = arith.addf %24, %26 : vector<8x1xf32>
    %c0_16 = arith.constant 0 : index
    %c0_17 = arith.constant 0 : index
    %c0_18 = arith.constant 0 : index
    %28 = vector.load %arg7[%c0_16, %c0_17, %c0_18] : memref<4x8x1xf32, #tpu.memory_space<vmem>>, vector<1x8x1xf32>
    %29 = vector.shape_cast %28 : vector<1x8x1xf32> to vector<8x1xf32>
    %30 = vector.shape_cast %27 : vector<8x1xf32> to vector<1x8x1xf32>
    tpu.vector_store %arg7[%c0_16, %c0_17, %c0_18], %30 {strides = array<i32>} : memref<4x8x1xf32, #tpu.memory_space<vmem>>, vector<1x8x1xf32>,
    %cst_19 = arith.constant dense<0.000000e+00> : vector<8x8xf32>
    %31 = tpu.matmul %23, %8, %cst_19 {dimension_numbers = #tpu.dot_dimension_numbers<[1], [0], [0], [1], [0, 0, 1, 1], [], []>} : vector<8x8xf32>, vector<8x8xf32>, vector<8x8xf32> -> vector<8x8xf32>
    %c0_20 = arith.constant 0 : index
    %c0_21 = arith.constant 0 : index
    %c0_22 = arith.constant 0 : index
    %32 = vector.load %arg8[%c0_20, %c0_21, %c0_22] : memref<4x8x8xf32, #tpu.memory_space<vmem>>, vector<1x8x8xf32>
    %33 = vector.shape_cast %32 : vector<1x8x8xf32> to vector<8x8xf32>
    %34 = vector.broadcast %20 : vector<8x1xf32> to vector<8x8xf32>
    %35 = arith.mulf %34, %33 : vector<8x8xf32>
    %36 = arith.addf %35, %31 : vector<8x8xf32>
    %c0_23 = arith.constant 0 : index
    %c0_24 = arith.constant 0 : index
    %c0_25 = arith.constant 0 : index
    %37 = vector.load %arg8[%c0_23, %c0_24, %c0_25] : memref<4x8x8xf32, #tpu.memory_space<vmem>>, vector<1x8x8xf32>
    %38 = vector.shape_cast %37 : vector<1x8x8xf32> to vector<8x8xf32>
    %39 = vector.shape_cast %36 : vector<8x8xf32> to vector<1x8x8xf32>
    tpu.vector_store %arg8[%c0_23, %c0_24, %c0_25], %39 {strides = array<i32>} : memref<4x8x8xf32, #tpu.memory_space<vmem>>, vector<1x8x8xf32>,
    %c0_26 = arith.constant 0 : index
    %c0_27 = arith.constant 0 : index
    %c0_28 = arith.constant 0 : index
    %40 = vector.load %arg6[%c0_26, %c0_27, %c0_28] : memref<4x8x1xf32, #tpu.memory_space<vmem>>, vector<1x8x1xf32>
    %41 = vector.shape_cast %40 : vector<1x8x1xf32> to vector<8x1xf32>
    %42 = vector.shape_cast %18 : vector<8x1xf32> to vector<1x8x1xf32>
    tpu.vector_store %arg6[%c0_26, %c0_27, %c0_28], %42 {strides = array<i32>} : memref<4x8x1xf32, #tpu.memory_space<vmem>>, vector<1x8x1xf32>,
    %c0_29 = arith.constant 0 : index
    %c0_30 = arith.constant 0 : index
    %c24 = arith.constant 24 : index
    %43 = vector.load %arg3[%c0_29, %c0_30, %c24] : memref<1x8x96xf32, #tpu.memory_space<vmem>>, vector<1x8x8xf32>
    %44 = vector.shape_cast %43 : vector<1x8x8xf32> to vector<8x8xf32>
    %c0_31 = arith.constant 0 : index
    %c0_32 = arith.constant 0 : index
    %c32 = arith.constant 32 : index
    %45 = vector.load %arg4[%c0_31, %c0_32, %c32] : memref<1x8x96xf32, #tpu.memory_space<vmem>>, vector<1x8x8xf32>
    %46 = vector.shape_cast %45 : vector<1x8x8xf32> to vector<8x8xf32>
    %c0_33 = arith.constant 0 : index
    %c0_34 = arith.constant 0 : index
    %c40 = arith.constant 40 : index
    %47 = vector.load %arg4[%c0_33, %c0_34, %c40] : memref<1x8x96xf32, #tpu.memory_space<vmem>>, vector<1x8x8xf32>
    %48 = vector.shape_cast %47 : vector<1x8x8xf32> to vector<8x8xf32>
    %cst_35 = arith.constant 0.353553385 : f32
    %49 = vector.broadcast %cst_35 : f32 to vector<8x8xf32>
    %50 = arith.mulf %44, %49 : vector<8x8xf32>
    %cst_36 = arith.constant dense<0.000000e+00> : vector<8x8xf32>
    %51 = tpu.matmul %50, %46, %cst_36 {dimension_numbers = #tpu.dot_dimension_numbers<[1], [1], [0], [0], [0, 0, 1, 0], [], []>} : vector<8x8xf32>, vector<8x8xf32>, vector<8x8xf32> -> vector<8x8xf32>
    %c1 = arith.constant 1 : index
    %c0_37 = arith.constant 0 : index
    %c0_38 = arith.constant 0 : index
    %52 = vector.load %arg6[%c1, %c0_37, %c0_38] : memref<4x8x1xf32, #tpu.memory_space<vmem>>, vector<1x8x1xf32>
    %53 = vector.shape_cast %52 : vector<1x8x1xf32> to vector<8x1xf32>
    %c1_39 = arith.constant 1 : index
    %c0_40 = arith.constant 0 : index
    %c0_41 = arith.constant 0 : index
    %54 = vector.load %arg7[%c1_39, %c0_40, %c0_41] : memref<4x8x1xf32, #tpu.memory_space<vmem>>, vector<1x8x1xf32>
    %55 = vector.shape_cast %54 : vector<1x8x1xf32> to vector<8x1xf32>
    %cst_42 = arith.constant dense<0xFF800000> : vector<8xf32>
    %56 = vector.multi_reduction <maximumf>, %51, %cst_42 [1] : vector<8x8xf32> to vector<8xf32>
    %57 = vector.shape_cast %56 : vector<8xf32> to vector<8x1xf32>
    %58 = arith.maximumf %53, %57 : vector<8x1xf32>
    %59 = arith.subf %53, %58 : vector<8x1xf32>
    %60 = math.exp %59 : vector<8x1xf32>
    %61 = vector.broadcast %58 : vector<8x1xf32> to vector<8x8xf32>
    %62 = arith.subf %51, %61 : vector<8x8xf32>
    %63 = math.exp %62 : vector<8x8xf32>
    %64 = arith.mulf %60, %55 : vector<8x1xf32>
    %cst_43 = arith.constant dense<0.000000e+00> : vector<8xf32>
    %65 = vector.multi_reduction <add>, %63, %cst_43 [1] : vector<8x8xf32> to vector<8xf32>
    %66 = vector.shape_cast %65 : vector<8xf32> to vector<8x1xf32>
    %67 = arith.addf %64, %66 : vector<8x1xf32>
    %c1_44 = arith.constant 1 : index
    %c0_45 = arith.constant 0 : index
    %c0_46 = arith.constant 0 : index
    %68 = vector.load %arg7[%c1_44, %c0_45, %c0_46] : memref<4x8x1xf32, #tpu.memory_space<vmem>>, vector<1x8x1xf32>
    %69 = vector.shape_cast %68 : vector<1x8x1xf32> to vector<8x1xf32>
    %70 = vector.shape_cast %67 : vector<8x1xf32> to vector<1x8x1xf32>
    tpu.vector_store %arg7[%c1_44, %c0_45, %c0_46], %70 {strides = array<i32>} : memref<4x8x1xf32, #tpu.memory_space<vmem>>, vector<1x8x1xf32>,
    %cst_47 = arith.constant dense<0.000000e+00> : vector<8x8xf32>
    %71 = tpu.matmul %63, %48, %cst_47 {dimension_numbers = #tpu.dot_dimension_numbers<[1], [0], [0], [1], [0, 0, 1, 1], [], []>} : vector<8x8xf32>, vector<8x8xf32>, vector<8x8xf32> -> vector<8x8xf32>
    %c1_48 = arith.constant 1 : index
    %c0_49 = arith.constant 0 : index
    %c0_50 = arith.constant 0 : index
    %72 = vector.load %arg8[%c1_48, %c0_49, %c0_50] : memref<4x8x8xf32, #tpu.memory_space<vmem>>, vector<1x8x8xf32>
    %73 = vector.shape_cast %72 : vector<1x8x8xf32> to vector<8x8xf32>
    %74 = vector.broadcast %60 : vector<8x1xf32> to vector<8x8xf32>
    %75 = arith.mulf %74, %73 : vector<8x8xf32>
    %76 = arith.addf %75, %71 : vector<8x8xf32>
    %c1_51 = arith.constant 1 : index
    %c0_52 = arith.constant 0 : index
    %c0_53 = arith.constant 0 : index
    %77 = vector.load %arg8[%c1_51, %c0_52, %c0_53] : memref<4x8x8xf32, #tpu.memory_space<vmem>>, vector<1x8x8xf32>
    %78 = vector.shape_cast %77 : vector<1x8x8xf32> to vector<8x8xf32>
    %79 = vector.shape_cast %76 : vector<8x8xf32> to vector<1x8x8xf32>
    tpu.vector_store %arg8[%c1_51, %c0_52, %c0_53], %79 {strides = array<i32>} : memref<4x8x8xf32, #tpu.memory_space<vmem>>, vector<1x8x8xf32>,
    %c1_54 = arith.constant 1 : index
    %c0_55 = arith.constant 0 : index
    %c0_56 = arith.constant 0 : index
    %80 = vector.load %arg6[%c1_54, %c0_55, %c0_56] : memref<4x8x1xf32, #tpu.memory_space<vmem>>, vector<1x8x1xf32>
    %81 = vector.shape_cast %80 : vector<1x8x1xf32> to vector<8x1xf32>
    %82 = vector.shape_cast %58 : vector<8x1xf32> to vector<1x8x1xf32>
    tpu.vector_store %arg6[%c1_54, %c0_55, %c0_56], %82 {strides = array<i32>} : memref<4x8x1xf32, #tpu.memory_space<vmem>>, vector<1x8x1xf32>,
    %c0_57 = arith.constant 0 : index
    %c0_58 = arith.constant 0 : index
    %c48 = arith.constant 48 : index
    %83 = vector.load %arg3[%c0_57, %c0_58, %c48] : memref<1x8x96xf32, #tpu.memory_space<vmem>>, vector<1x8x8xf32>
    %84 = vector.shape_cast %83 : vector<1x8x8xf32> to vector<8x8xf32>
    %c0_59 = arith.constant 0 : index
    %c0_60 = arith.constant 0 : index
    %c56 = arith.constant 56 : index
    %85 = vector.load %arg4[%c0_59, %c0_60, %c56] : memref<1x8x96xf32, #tpu.memory_space<vmem>>, vector<1x8x8xf32>
    %86 = vector.shape_cast %85 : vector<1x8x8xf32> to vector<8x8xf32>
    %c0_61 = arith.constant 0 : index
    %c0_62 = arith.constant 0 : index
    %c64 = arith.constant 64 : index
    %87 = vector.load %arg4[%c0_61, %c0_62, %c64] : memref<1x8x96xf32, #tpu.memory_space<vmem>>, vector<1x8x8xf32>
    %88 = vector.shape_cast %87 : vector<1x8x8xf32> to vector<8x8xf32>
    %cst_63 = arith.constant 0.353553385 : f32
    %89 = vector.broadcast %cst_63 : f32 to vector<8x8xf32>
    %90 = arith.mulf %84, %89 : vector<8x8xf32>
    %cst_64 = arith.constant dense<0.000000e+00> : vector<8x8xf32>
    %91 = tpu.matmul %90, %86, %cst_64 {dimension_numbers = #tpu.dot_dimension_numbers<[1], [1], [0], [0], [0, 0, 1, 0], [], []>} : vector<8x8xf32>, vector<8x8xf32>, vector<8x8xf32> -> vector<8x8xf32>
    %c2 = arith.constant 2 : index
    %c0_65 = arith.constant 0 : index
    %c0_66 = arith.constant 0 : index
    %92 = vector.load %arg6[%c2, %c0_65, %c0_66] : memref<4x8x1xf32, #tpu.memory_space<vmem>>, vector<1x8x1xf32>
    %93 = vector.shape_cast %92 : vector<1x8x1xf32> to vector<8x1xf32>
    %c2_67 = arith.constant 2 : index
    %c0_68 = arith.constant 0 : index
    %c0_69 = arith.constant 0 : index
    %94 = vector.load %arg7[%c2_67, %c0_68, %c0_69] : memref<4x8x1xf32, #tpu.memory_space<vmem>>, vector<1x8x1xf32>
    %95 = vector.shape_cast %94 : vector<1x8x1xf32> to vector<8x1xf32>
    %cst_70 = arith.constant dense<0xFF800000> : vector<8xf32>
    %96 = vector.multi_reduction <maximumf>, %91, %cst_70 [1] : vector<8x8xf32> to vector<8xf32>
    %97 = vector.shape_cast %96 : vector<8xf32> to vector<8x1xf32>
    %98 = arith.maximumf %93, %97 : vector<8x1xf32>
    %99 = arith.subf %93, %98 : vector<8x1xf32>
    %100 = math.exp %99 : vector<8x1xf32>
    %101 = vector.broadcast %98 : vector<8x1xf32> to vector<8x8xf32>
    %102 = arith.subf %91, %101 : vector<8x8xf32>
    %103 = math.exp %102 : vector<8x8xf32>
    %104 = arith.mulf %100, %95 : vector<8x1xf32>
    %cst_71 = arith.constant dense<0.000000e+00> : vector<8xf32>
    %105 = vector.multi_reduction <add>, %103, %cst_71 [1] : vector<8x8xf32> to vector<8xf32>
    %106 = vector.shape_cast %105 : vector<8xf32> to vector<8x1xf32>
    %107 = arith.addf %104, %106 : vector<8x1xf32>
    %c2_72 = arith.constant 2 : index
    %c0_73 = arith.constant 0 : index
    %c0_74 = arith.constant 0 : index
    %108 = vector.load %arg7[%c2_72, %c0_73, %c0_74] : memref<4x8x1xf32, #tpu.memory_space<vmem>>, vector<1x8x1xf32>
    %109 = vector.shape_cast %108 : vector<1x8x1xf32> to vector<8x1xf32>
    %110 = vector.shape_cast %107 : vector<8x1xf32> to vector<1x8x1xf32>
    tpu.vector_store %arg7[%c2_72, %c0_73, %c0_74], %110 {strides = array<i32>} : memref<4x8x1xf32, #tpu.memory_space<vmem>>, vector<1x8x1xf32>,
    %cst_75 = arith.constant dense<0.000000e+00> : vector<8x8xf32>
    %111 = tpu.matmul %103, %88, %cst_75 {dimension_numbers = #tpu.dot_dimension_numbers<[1], [0], [0], [1], [0, 0, 1, 1], [], []>} : vector<8x8xf32>, vector<8x8xf32>, vector<8x8xf32> -> vector<8x8xf32>
    %c2_76 = arith.constant 2 : index
    %c0_77 = arith.constant 0 : index
    %c0_78 = arith.constant 0 : index
    %112 = vector.load %arg8[%c2_76, %c0_77, %c0_78] : memref<4x8x8xf32, #tpu.memory_space<vmem>>, vector<1x8x8xf32>
    %113 = vector.shape_cast %112 : vector<1x8x8xf32> to vector<8x8xf32>
    %114 = vector.broadcast %100 : vector<8x1xf32> to vector<8x8xf32>
    %115 = arith.mulf %114, %113 : vector<8x8xf32>
    %116 = arith.addf %115, %111 : vector<8x8xf32>
    %c2_79 = arith.constant 2 : index
    %c0_80 = arith.constant 0 : index
    %c0_81 = arith.constant 0 : index
    %117 = vector.load %arg8[%c2_79, %c0_80, %c0_81] : memref<4x8x8xf32, #tpu.memory_space<vmem>>, vector<1x8x8xf32>
    %118 = vector.shape_cast %117 : vector<1x8x8xf32> to vector<8x8xf32>
    %119 = vector.shape_cast %116 : vector<8x8xf32> to vector<1x8x8xf32>
    tpu.vector_store %arg8[%c2_79, %c0_80, %c0_81], %119 {strides = array<i32>} : memref<4x8x8xf32, #tpu.memory_space<vmem>>, vector<1x8x8xf32>,
    %c2_82 = arith.constant 2 : index
    %c0_83 = arith.constant 0 : index
    %c0_84 = arith.constant 0 : index
    %120 = vector.load %arg6[%c2_82, %c0_83, %c0_84] : memref<4x8x1xf32, #tpu.memory_space<vmem>>, vector<1x8x1xf32>
    %121 = vector.shape_cast %120 : vector<1x8x1xf32> to vector<8x1xf32>
    %122 = vector.shape_cast %98 : vector<8x1xf32> to vector<1x8x1xf32>
    tpu.vector_store %arg6[%c2_82, %c0_83, %c0_84], %122 {strides = array<i32>} : memref<4x8x1xf32, #tpu.memory_space<vmem>>, vector<1x8x1xf32>,
    %c0_85 = arith.constant 0 : index
    %c0_86 = arith.constant 0 : index
    %c72 = arith.constant 72 : index
    %123 = vector.load %arg3[%c0_85, %c0_86, %c72] : memref<1x8x96xf32, #tpu.memory_space<vmem>>, vector<1x8x8xf32>
    %124 = vector.shape_cast %123 : vector<1x8x8xf32> to vector<8x8xf32>
    %c0_87 = arith.constant 0 : index
    %c0_88 = arith.constant 0 : index
    %c80 = arith.constant 80 : index
    %125 = vector.load %arg4[%c0_87, %c0_88, %c80] : memref<1x8x96xf32, #tpu.memory_space<vmem>>, vector<1x8x8xf32>
    %126 = vector.shape_cast %125 : vector<1x8x8xf32> to vector<8x8xf32>
    %c0_89 = arith.constant 0 : index
    %c0_90 = arith.constant 0 : index
    %c88 = arith.constant 88 : index
    %127 = vector.load %arg4[%c0_89, %c0_90, %c88] : memref<1x8x96xf32, #tpu.memory_space<vmem>>, vector<1x8x8xf32>
    %128 = vector.shape_cast %127 : vector<1x8x8xf32> to vector<8x8xf32>
    %cst_91 = arith.constant 0.353553385 : f32
    %129 = vector.broadcast %cst_91 : f32 to vector<8x8xf32>
    %130 = arith.mulf %124, %129 : vector<8x8xf32>
    %cst_92 = arith.constant dense<0.000000e+00> : vector<8x8xf32>
    %131 = tpu.matmul %130, %126, %cst_92 {dimension_numbers = #tpu.dot_dimension_numbers<[1], [1], [0], [0], [0, 0, 1, 0], [], []>} : vector<8x8xf32>, vector<8x8xf32>, vector<8x8xf32> -> vector<8x8xf32>
    %c3 = arith.constant 3 : index
    %c0_93 = arith.constant 0 : index
    %c0_94 = arith.constant 0 : index
    %132 = vector.load %arg6[%c3, %c0_93, %c0_94] : memref<4x8x1xf32, #tpu.memory_space<vmem>>, vector<1x8x1xf32>
    %133 = vector.shape_cast %132 : vector<1x8x1xf32> to vector<8x1xf32>
    %c3_95 = arith.constant 3 : index
    %c0_96 = arith.constant 0 : index
    %c0_97 = arith.constant 0 : index
    %134 = vector.load %arg7[%c3_95, %c0_96, %c0_97] : memref<4x8x1xf32, #tpu.memory_space<vmem>>, vector<1x8x1xf32>
    %135 = vector.shape_cast %134 : vector<1x8x1xf32> to vector<8x1xf32>
    %cst_98 = arith.constant dense<0xFF800000> : vector<8xf32>
    %136 = vector.multi_reduction <maximumf>, %131, %cst_98 [1] : vector<8x8xf32> to vector<8xf32>
    %137 = vector.shape_cast %136 : vector<8xf32> to vector<8x1xf32>
    %138 = arith.maximumf %133, %137 : vector<8x1xf32>
    %139 = arith.subf %133, %138 : vector<8x1xf32>
    %140 = math.exp %139 : vector<8x1xf32>
    %141 = vector.broadcast %138 : vector<8x1xf32> to vector<8x8xf32>
    %142 = arith.subf %131, %141 : vector<8x8xf32>
    %143 = math.exp %142 : vector<8x8xf32>
    %144 = arith.mulf %140, %135 : vector<8x1xf32>
    %cst_99 = arith.constant dense<0.000000e+00> : vector<8xf32>
    %145 = vector.multi_reduction <add>, %143, %cst_99 [1] : vector<8x8xf32> to vector<8xf32>
    %146 = vector.shape_cast %145 : vector<8xf32> to vector<8x1xf32>
    %147 = arith.addf %144, %146 : vector<8x1xf32>
    %c3_100 = arith.constant 3 : index
    %c0_101 = arith.constant 0 : index
    %c0_102 = arith.constant 0 : index
    %148 = vector.load %arg7[%c3_100, %c0_101, %c0_102] : memref<4x8x1xf32, #tpu.memory_space<vmem>>, vector<1x8x1xf32>
    %149 = vector.shape_cast %148 : vector<1x8x1xf32> to vector<8x1xf32>
    %150 = vector.shape_cast %147 : vector<8x1xf32> to vector<1x8x1xf32>
    tpu.vector_store %arg7[%c3_100, %c0_101, %c0_102], %150 {strides = array<i32>} : memref<4x8x1xf32, #tpu.memory_space<vmem>>, vector<1x8x1xf32>,
    %cst_103 = arith.constant dense<0.000000e+00> : vector<8x8xf32>
    %151 = tpu.matmul %143, %128, %cst_103 {dimension_numbers = #tpu.dot_dimension_numbers<[1], [0], [0], [1], [0, 0, 1, 1], [], []>} : vector<8x8xf32>, vector<8x8xf32>, vector<8x8xf32> -> vector<8x8xf32>
    %c3_104 = arith.constant 3 : index
    %c0_105 = arith.constant 0 : index
    %c0_106 = arith.constant 0 : index
    %152 = vector.load %arg8[%c3_104, %c0_105, %c0_106] : memref<4x8x8xf32, #tpu.memory_space<vmem>>, vector<1x8x8xf32>
    %153 = vector.shape_cast %152 : vector<1x8x8xf32> to vector<8x8xf32>
    %154 = vector.broadcast %140 : vector<8x1xf32> to vector<8x8xf32>
    %155 = arith.mulf %154, %153 : vector<8x8xf32>
    %156 = arith.addf %155, %151 : vector<8x8xf32>
    %c3_107 = arith.constant 3 : index
    %c0_108 = arith.constant 0 : index
    %c0_109 = arith.constant 0 : index
    %157 = vector.load %arg8[%c3_107, %c0_108, %c0_109] : memref<4x8x8xf32, #tpu.memory_space<vmem>>, vector<1x8x8xf32>
    %158 = vector.shape_cast %157 : vector<1x8x8xf32> to vector<8x8xf32>
    %159 = vector.shape_cast %156 : vector<8x8xf32> to vector<1x8x8xf32>
    tpu.vector_store %arg8[%c3_107, %c0_108, %c0_109], %159 {strides = array<i32>} : memref<4x8x8xf32, #tpu.memory_space<vmem>>, vector<1x8x8xf32>,
    %c3_110 = arith.constant 3 : index
    %c0_111 = arith.constant 0 : index
    %c0_112 = arith.constant 0 : index
    %160 = vector.load %arg6[%c3_110, %c0_111, %c0_112] : memref<4x8x1xf32, #tpu.memory_space<vmem>>, vector<1x8x1xf32>
    %161 = vector.shape_cast %160 : vector<1x8x1xf32> to vector<8x1xf32>
    %162 = vector.shape_cast %138 : vector<8x1xf32> to vector<1x8x1xf32>
    tpu.vector_store %arg6[%c3_110, %c0_111, %c0_112], %162 {strides = array<i32>} : memref<4x8x1xf32, #tpu.memory_space<vmem>>, vector<1x8x1xf32>,
    %c0_i32_113 = arith.constant 0 : i32
    %163 = arith.cmpi eq, %arg2, %c0_i32_113 : i32
    %164 = arith.extui %163 : i1 to i32
    %c0_i32_114 = arith.constant 0 : i32
    %165 = arith.cmpi ne, %164, %c0_i32_114 : i32
    scf.if %165 {
      %c0_115 = arith.constant 0 : index
      %c0_116 = arith.constant 0 : index
      %c0_117 = arith.constant 0 : index
      %166 = vector.load %arg7[%c0_115, %c0_116, %c0_117] : memref<4x8x1xf32, #tpu.memory_space<vmem>>, vector<4x8x1xf32>
      %167 = tpu.reciprocal %166 {approx = true} : vector<4x8x1xf32> -> vector<4x8x1xf32>
      %c0_118 = arith.constant 0 : index
      %c0_119 = arith.constant 0 : index
      %c0_120 = arith.constant 0 : index
      %168 = vector.load %arg8[%c0_118, %c0_119, %c0_120] : memref<4x8x8xf32, #tpu.memory_space<vmem>>, vector<4x8x8xf32>
      %169 = vector.broadcast %167 : vector<4x8x1xf32> to vector<4x8x8xf32>
      %170 = arith.mulf %168, %169 : vector<4x8x8xf32>
      %c0_121 = arith.constant 0 : index
      %c0_122 = arith.constant 0 : index
      %c0_123 = arith.constant 0 : index
      %c0_124 = arith.constant 0 : index
      %171 = vector.load %arg5[%c0_121, %c0_122, %c0_123, %c0_124] : memref<1x4x8x8xf32, #tpu.memory_space<vmem>>, vector<1x4x8x8xf32>
      %172 = vector.shape_cast %171 : vector<1x4x8x8xf32> to vector<4x8x8xf32>
      %173 = vector.shape_cast %170 : vector<4x8x8xf32> to vector<1x4x8x8xf32>
      tpu.vector_store %arg5[%c0_121, %c0_122, %c0_123, %c0_124], %173 {strides = array<i32>} : memref<1x4x8x8xf32, #tpu.memory_space<vmem>>, vector<1x4x8x8xf32>,
    } else {
    }
    return
  }
  func.func @transform_0(%arg0: i32, %arg1: i32, %arg2: i32) -> (i32, i32, i32) {
    %c0_i32 = arith.constant 0 : i32
    %c0_i32_0 = arith.constant 0 : i32
    return %arg0, %arg1, %c0_i32 : i32, i32, i32
  }
  func.func @transform_1(%arg0: i32, %arg1: i32, %arg2: i32) -> (i32, i32, i32) {
    %c0_i32 = arith.constant 0 : i32
    %c0_i32_0 = arith.constant 0 : i32
    return %arg0, %arg2, %c0_i32 : i32, i32, i32
  }
  func.func @transform_2(%arg0: i32, %arg1: i32, %arg2: i32) -> (i32, i32, i32, i32) {
    %c0_i32 = arith.constant 0 : i32
    %c0_i32_0 = arith.constant 0 : i32
    %c0_i32_1 = arith.constant 0 : i32
    return %arg0, %c0_i32, %arg1, %c0_i32_0 : i32, i32, i32, i32
  }
}

</mosaic_0001>

<bundles_post_ra>
// kernel: multi_head_attention.5
= control target key start
LH: loop header
LB: loop body
LE: loop exit
PB: predicated region body
PF: predicated region fallthrough
CT: control target
= control target key end

     0   :  { %8 = vsyncpa [#allocation4], 0  ;;  %s417_s0 = inlined_call_operand.hbm [shape: f32[16,32], index: 0, kind: input, shape index: {}]   ;;  %s418_s1 = inlined_call_operand.hbm [shape: f32[32,32], index: 1, kind: input, shape index: {}]   ;;  %s419_s2 = inlined_call_operand.hbm [shape: f32[1,32], index: 2, kind: input, shape index: {}]   ;;  %s420_s3 = inlined_call_operand.hbm [shape: f32[16,32], index: 3, kind: output, shape index: {}]  }
   0x1   :  { %9 = vsyncpa [#allocation7], 0 }
   0x2   :  { %10 = vsyncpa [#allocation5], 0  ;;  %s318_s12 = smov [#allocation6]   ;;  %s319_s14 = smov [#allocation3]  }
   0x3   :  { %s28_s13 = sshll.u32 %s318_s12, 4  ;;  %s16_s15 = sshll.u32 %s319_s14, 4  ;;  %s29_s13 = int_to_ptr.vmem [resolvable:$true] %s28_s13  ;;  %s345_s15 = int_to_ptr.vmem [resolvable:$true] %s16_s15 }
   0x4   :  { %s224_s18 = scalar_lea.hbm %s418_s1, 512 }
   0x5   :  { %p225_p0 = scmp.ne.s32.totalorder %s418_s1, %s224_s18  ;;  %p228_p1 = scmp.lt.u32.totalorder %s224_s18, %s418_s1 }
   0x7   :  { %p230_p2 = pnand %p228_p1, %p225_p0 }
   0x9   :  { %233 = shalt.err (!%p230_p2)
}
   0xa   :  { %s234_s23 = scalar_lea.vmem %s29_s13, 512  ;;  %p239_p4 = scmp.lt.s32.totalorder %s29_s13, %s29_s13 }
   0xb   :  { %p235_p3 = scmp.ne.s32.totalorder %s29_s13, %s234_s23  ;;  %p240_p5 = scmp.lt.s32.totalorder %s234_s23, %s234_s23 }
   0xd   :  { %p241_p6 = por %p240_p5, %p239_p4 }
   0xf   :  { %p242_p7 = pnand %p241_p6, %p235_p3 }
  0x11   :  { %245 = shalt.err (!%p242_p7)
}
  0x12   :  { %s320_s24 = smov 128   ;;  %s321_s25 = smov 8  }
  0x13   :  { %34 = dma.hbm_to_vmem [thread:$0]  %s418_s1, 512, %s29_s13, [#allocation7], %s320_s24, %s320_s24, %s321_s25  }
  0x14   :  { %s246_s30 = scalar_lea.hbm %s417_s0, 256 }
  0x15   :  { %p247_p8 = scmp.ne.s32.totalorder %s417_s0, %s246_s30  ;;  %p250_p9 = scmp.lt.u32.totalorder %s246_s30, %s417_s0 }
  0x17   :  { %p252_p10 = pnand %p250_p9, %p247_p8 }
  0x19   :  { %255 = shalt.err (!%p252_p10)
}
  0x1a   :  { %s256_s8 = scalar_lea.vmem %s345_s15, 256  ;;  %p261_p12 = scmp.lt.s32.totalorder %s345_s15, %s345_s15 }
  0x1b   :  { %p257_p11 = scmp.ne.s32.totalorder %s345_s15, %s256_s8  ;;  %p262_p13 = scmp.lt.s32.totalorder %s256_s8, %s256_s8 }
  0x1d   :  { %p263_p0 = por %p262_p13, %p261_p12 }
  0x1f   :  { %p264_p1 = pnand %p263_p0, %p257_p11 }
  0x21   :  { %267 = shalt.err (!%p264_p1)
}
  0x22   :  { %22 = dma.hbm_to_vmem [thread:$0]  %s417_s0, 256, %s345_s15, [#allocation4], %s320_s24, %s320_s24, %s321_s25  }
  0x23   :  { %s322_s10 = smov [#allocation8]   ;;  %s268_s14 = scalar_lea.hbm %s419_s2, 16 }
  0x24   :  { %s41_s11 = sshll.u32 %s322_s10, 4  ;;  %p269_p2 = scmp.ne.s32.totalorder %s419_s2, %s268_s14  ;;  %s42_s11 = int_to_ptr.vmem [resolvable:$true] %s41_s11 }
  0x25   :  { %p272_p3 = scmp.lt.u32.totalorder %s268_s14, %s419_s2 }
  0x27   :  { %p274_p4 = pnand %p272_p3, %p269_p2 }
  0x29   :  { %277 = shalt.err (!%p274_p4)
}
  0x2a   :  { %s278_s20 = scalar_lea.vmem %s42_s11, 16  ;;  %s282_s0 = scalar_lea.vmem %s42_s11, 32 }
  0x2b   :  { %p279_p5 = scmp.ne.s32.totalorder %s42_s11, %s278_s20  ;;  %p283_p6 = scmp.lt.s32.totalorder %s42_s11, %s42_s11 }
  0x2c   :  { %p284_p7 = scmp.lt.s32.totalorder %s282_s0, %s278_s20 }
  0x2e   :  { %p285_p8 = por %p284_p7, %p283_p6 }
  0x30   :  { %p286_p9 = pnand %p285_p8, %p279_p5 }
  0x32   :  { %289 = shalt.err (!%p286_p9)
}
  0x33   :  { %44 = dma.hbm_to_vmem [thread:$0]  %s419_s2, 16, %s42_s11, [#allocation7]  }
  0x34   :  { %312 = dma.done.wait [#allocation4], 256  }
  0x35   :  { %313 = vsyncadd [#allocation4], 4294967040 }
  0x36   :  { %314 = dma.done.wait [#allocation7], 528  }
  0x37   :  { %315 = vsyncadd [#allocation7], 4294966768  ;;  %vm58_vm0 = vcmask 261120   ;;  %v323_v0 = vmov 0.0   ;;  %v63_v1 = vld [vmem:[#allocation6] sm:$0xff]  ;;  %v64_v2 = vld [vmem:[#allocation6 + $0x8] sm:$0xff] }
  0x38   :  { %60 = vst.msk [vmem:[#allocation2 + $0x8] sm:$0xff] %vm58_vm0, %v323_v0  ;;  %59 = vst.msk [vmem:[#allocation2] sm:$0xff] %vm58_vm0, %v323_v0  ;;  %v65_v3 = vld [vmem:[#allocation6 + $0x10] sm:$0xff]  ;;  %v209_v4 = vpack.c.bf16 %v64_v2, %v63_v1  ;;  %v66_v5 = vld [vmem:[#allocation6 + $0x18] sm:$0xff]  ;;  %s324_s2 = smov [#allocation9]  }
  0x39   :  { %v61_v6 = vld [vmem:[#allocation3] sm:$0xff]  ;;  %v213_v7 = vpack.c.bf16 %v66_v5, %v65_v3  ;;  %v62_v8 = vld [vmem:[#allocation3 + $0x8] sm:$0xff]  ;;  %v191_v15 = vld [vmem:[#allocation8] ss:$0 sm:$0xff]  ;;  %s176_s22 = sshll.u32 %s324_s2, 4  ;;  %s177_s22 = int_to_ptr.vmem [resolvable:$true] %s176_s22 }
  0x3a   :  { %206 = vmatprep.mubr.msk.f32.mxu0 %vm58_vm0, %v61_v6  ;;  %210 = vmatprep.subr.bf16.mxu0 %v209_v4  ;;  %s290_s23 = scalar_lea.vmem %s177_s22, 256  ;;  %p295_p11 = scmp.lt.s32.totalorder %s177_s22, %s177_s22 }
  0x3b   :  { %212 = vmatpush3.bf16.msra.mxu0 %v209_v4  ;;  %p291_p10 = scmp.ne.s32.totalorder %s177_s22, %s290_s23  ;;  %p296_p12 = scmp.lt.s32.totalorder %s290_s23, %s290_s23 }
  0x3c   :  { %214 = vmatprep.subr.bf16.mxu0 %v213_v7 }
  0x3d   :  { %p297_p13 = por %p296_p12, %p295_p11 }
  0x3f   :  { %216 = vmatpush3.bf16.msra.mxu0 %v213_v7  ;;  %v68_v9 = vld [vmem:[#allocation2 + $0x8] sm:$0xff]  ;;  %v67_v10 = vld [vmem:[#allocation2] sm:$0xff]  ;;  %p298_p0 = pnand %p297_p13, %p291_p10 }
  0x42   :  { %207 = vmatmul.mubr.msk.f32.vlgmr.msra.gmra.mrb[0].mxu0 %vm58_vm0, %v62_v8 }
 0x115   :  { %v208_v11 = vpop.f32.mrb[0].mxu0 }
 0x116   :  { %v152_v12 = vadd.f32 %v208_v11, %v68_v9  ;;  %v142_v13 = vpop.f32.mrb[1].mxu0 }
 0x117   :  { %v151_v14 = vadd.f32 %v142_v13, %v67_v10 }
 0x118   :  { %154 = vst.msk [vmem:[#allocation2 + $0x8] sm:$0xff] %vm58_vm0, %v152_v12 }
 0x119   :  { %153 = vst.msk [vmem:[#allocation2] sm:$0xff] %vm58_vm0, %v151_v14 }
 0x11f   :  { %v159_v16 = vld [vmem:[#allocation2 + $0x8] sm:$0xff] }
 0x120   :  { %v158_v17 = vld [vmem:[#allocation2] sm:$0xff]  ;;  %v168_v18 = vadd.f32 %v191_v15, %v159_v16 }
 0x121   :  { %v167_v19 = vadd.f32 %v191_v15, %v158_v17 }
 0x122   :  { %170 = vst.msk [vmem:[#allocation9 + $0x8] sm:$0xff] %vm58_vm0, %v168_v18 }
 0x123   :  { %169 = vst.msk [vmem:[#allocation9] sm:$0xff] %vm58_vm0, %v167_v19 }
 0x124   :  { %301 = shalt.err (!%p298_p0)
}
 0x125   :  { %s302_s28 = scalar_lea.hbm %s420_s3, 256 }
 0x126   :  { %p303_p1 = scmp.ne.s32.totalorder %s420_s3, %s302_s28  ;;  %p306_p2 = scmp.lt.u32.totalorder %s302_s28, %s420_s3 }
 0x128   :  { %p308_p3 = pnand %p306_p2, %p303_p1 }
 0x12a   :  { %311 = shalt.err (!%p308_p3)
}
 0x12b   :  { %182 = dma.vmem_to_hbm [thread:$0]  %s177_s22, 256, %s420_s3, [#allocation5], %s320_s24, %s320_s24, %s321_s25  }
 0x12c   :  { %316 = dma.done.wait [#allocation5], 256  }
 0x12d   :  { %317 = vsyncadd [#allocation5], 4294967040 }
 0x12e   :  { %186 = vsyncpa [#allocation4], 1 }
 0x12f   :  { %187 = vsyncpa [#allocation7], 1 }
 0x130   :  { %188 = vsyncpa [#allocation5], 1 }

// kernel: multi_head_attention.3
= control target key start
LH: loop header
LB: loop body
LE: loop exit
PB: predicated region body
PF: predicated region fallthrough
CT: control target
= control target key end

     0   :  { %8 = vsyncpa [#allocation4], 0  ;;  %s416_s0 = inlined_call_operand.hbm [shape: f32[16,32], index: 0, kind: input, shape index: {}]   ;;  %s417_s1 = inlined_call_operand.hbm [shape: f32[32,96], index: 1, kind: input, shape index: {}]   ;;  %s418_s2 = inlined_call_operand.hbm [shape: f32[1,96], index: 2, kind: input, shape index: {}]   ;;  %s419_s3 = inlined_call_operand.hbm [shape: f32[16,96], index: 3, kind: output, shape index: {}]  }
   0x1   :  { %9 = vsyncpa [#allocation7], 0 }
   0x2   :  { %10 = vsyncpa [#allocation5], 0  ;;  %s319_s12 = smov [#allocation6]   ;;  %s320_s14 = smov [#allocation3]  }
   0x3   :  { %s28_s13 = sshll.u32 %s319_s12, 4  ;;  %s16_s15 = sshll.u32 %s320_s14, 4  ;;  %s29_s13 = int_to_ptr.vmem [resolvable:$true] %s28_s13  ;;  %s346_s15 = int_to_ptr.vmem [resolvable:$true] %s16_s15 }
   0x4   :  { %s225_s18 = scalar_lea.hbm %s417_s1, 512 }
   0x5   :  { %p226_p0 = scmp.ne.s32.totalorder %s417_s1, %s225_s18  ;;  %p229_p1 = scmp.lt.u32.totalorder %s225_s18, %s417_s1 }
   0x7   :  { %p231_p2 = pnand %p229_p1, %p226_p0 }
   0x9   :  { %234 = shalt.err (!%p231_p2)
}
   0xa   :  { %s235_s23 = scalar_lea.vmem %s29_s13, 512  ;;  %p240_p4 = scmp.lt.s32.totalorder %s29_s13, %s29_s13 }
   0xb   :  { %p236_p3 = scmp.ne.s32.totalorder %s29_s13, %s235_s23  ;;  %p241_p5 = scmp.lt.s32.totalorder %s235_s23, %s235_s23 }
   0xd   :  { %p242_p6 = por %p241_p5, %p240_p4 }
   0xf   :  { %p243_p7 = pnand %p242_p6, %p236_p3 }
  0x11   :  { %246 = shalt.err (!%p243_p7)
}
  0x12   :  { %s321_s24 = smov 128   ;;  %s322_s25 = smov 8  }
  0x13   :  { %34 = dma.hbm_to_vmem [thread:$0]  %s417_s1, 512, %s29_s13, [#allocation7], %s321_s24, %s321_s24, %s322_s25  }
  0x14   :  { %s247_s30 = scalar_lea.hbm %s416_s0, 256 }
  0x15   :  { %p248_p8 = scmp.ne.s32.totalorder %s416_s0, %s247_s30  ;;  %p251_p9 = scmp.lt.u32.totalorder %s247_s30, %s416_s0 }
  0x17   :  { %p253_p10 = pnand %p251_p9, %p248_p8 }
  0x19   :  { %256 = shalt.err (!%p253_p10)
}
  0x1a   :  { %s257_s8 = scalar_lea.vmem %s346_s15, 256  ;;  %p262_p12 = scmp.lt.s32.totalorder %s346_s15, %s346_s15 }
  0x1b   :  { %p258_p11 = scmp.ne.s32.totalorder %s346_s15, %s257_s8  ;;  %p263_p13 = scmp.lt.s32.totalorder %s257_s8, %s257_s8 }
  0x1d   :  { %p264_p0 = por %p263_p13, %p262_p12 }
  0x1f   :  { %p265_p1 = pnand %p264_p0, %p258_p11 }
  0x21   :  { %268 = shalt.err (!%p265_p1)
}
  0x22   :  { %22 = dma.hbm_to_vmem [thread:$0]  %s416_s0, 256, %s346_s15, [#allocation4], %s321_s24, %s321_s24, %s322_s25  }
  0x23   :  { %s323_s10 = smov [#allocation8]   ;;  %s269_s14 = scalar_lea.hbm %s418_s2, 16 }
  0x24   :  { %s41_s11 = sshll.u32 %s323_s10, 4  ;;  %p270_p2 = scmp.ne.s32.totalorder %s418_s2, %s269_s14  ;;  %s42_s11 = int_to_ptr.vmem [resolvable:$true] %s41_s11 }
  0x25   :  { %p273_p3 = scmp.lt.u32.totalorder %s269_s14, %s418_s2 }
  0x27   :  { %p275_p4 = pnand %p273_p3, %p270_p2 }
  0x29   :  { %278 = shalt.err (!%p275_p4)
}
  0x2a   :  { %s279_s20 = scalar_lea.vmem %s42_s11, 16  ;;  %s283_s0 = scalar_lea.vmem %s42_s11, 32 }
  0x2b   :  { %p280_p5 = scmp.ne.s32.totalorder %s42_s11, %s279_s20  ;;  %p284_p6 = scmp.lt.s32.totalorder %s42_s11, %s42_s11 }
  0x2c   :  { %p285_p7 = scmp.lt.s32.totalorder %s283_s0, %s279_s20 }
  0x2e   :  { %p286_p8 = por %p285_p7, %p284_p6 }
  0x30   :  { %p287_p9 = pnand %p286_p8, %p280_p5 }
  0x32   :  { %290 = shalt.err (!%p287_p9)
}
  0x33   :  { %44 = dma.hbm_to_vmem [thread:$0]  %s418_s2, 16, %s42_s11, [#allocation7]  }
  0x34   :  { %313 = dma.done.wait [#allocation4], 256  }
  0x35   :  { %314 = vsyncadd [#allocation4], 4294967040 }
  0x36   :  { %315 = dma.done.wait [#allocation7], 528  }
  0x37   :  { %316 = vsyncadd [#allocation7], 4294966768  ;;  %vm58_vm0 = vcmask 785408   ;;  %v324_v0 = vmov 0.0   ;;  %vm69_vm1 = vcmask 261120   ;;  %v63_v1 = vld [vmem:[#allocation6] sm:$0xff] }
  0x38   :  { %60 = vst.msk [vmem:[#allocation2 + $0x8] sm:$0xff] %vm58_vm0, %v324_v0  ;;  %59 = vst.msk [vmem:[#allocation2] sm:$0xff] %vm58_vm0, %v324_v0  ;;  %v64_v2 = vld [vmem:[#allocation6 + $0x8] sm:$0xff]  ;;  %v65_v3 = vld [vmem:[#allocation6 + $0x10] sm:$0xff]  ;;  %s325_s2 = smov [#allocation9]  }
  0x39   :  { %v210_v4 = vpack.c.bf16 %v64_v2, %v63_v1  ;;  %v66_v5 = vld [vmem:[#allocation6 + $0x18] sm:$0xff]  ;;  %v61_v6 = vld [vmem:[#allocation3] sm:$0xff]  ;;  %v192_v15 = vld [vmem:[#allocation8] ss:$0 sm:$0xff]  ;;  %s177_s22 = sshll.u32 %s325_s2, 4  ;;  %s178_s22 = int_to_ptr.vmem [resolvable:$true] %s177_s22 }
  0x3a   :  { %v214_v7 = vpack.c.bf16 %v66_v5, %v65_v3  ;;  %207 = vmatprep.mubr.msk.f32.mxu0 %vm69_vm1, %v61_v6  ;;  %v62_v8 = vld [vmem:[#allocation3 + $0x8] sm:$0xff]  ;;  %s291_s23 = scalar_lea.vmem %s178_s22, 256  ;;  %p296_p11 = scmp.lt.s32.totalorder %s178_s22, %s178_s22 }
  0x3b   :  { %211 = vmatprep.subr.bf16.mxu0 %v210_v4  ;;  %p292_p10 = scmp.ne.s32.totalorder %s178_s22, %s291_s23  ;;  %p297_p12 = scmp.lt.s32.totalorder %s291_s23, %s291_s23 }
  0x3c   :  { %213 = vmatpush3.bf16.msra.mxu0 %v210_v4 }
  0x3d   :  { %215 = vmatprep.subr.bf16.mxu0 %v214_v7  ;;  %p298_p13 = por %p297_p12, %p296_p11 }
  0x3f   :  { %v68_v9 = vld [vmem:[#allocation2 + $0x8] sm:$0xff]  ;;  %v67_v10 = vld [vmem:[#allocation2] sm:$0xff]  ;;  %p299_p0 = pnand %p298_p13, %p292_p10 }
  0x40   :  { %217 = vmatpush3.bf16.msra.mxu0 %v214_v7 }
  0x43   :  { %208 = vmatmul.mubr.msk.f32.vlgmr.msra.gmra.mrb[0].mxu0 %vm69_vm1, %v62_v8 }
 0x116   :  { %v209_v11 = vpop.f32.mrb[0].mxu0 }
 0x117   :  { %v152_v12 = vadd.f32 %v209_v11, %v68_v9  ;;  %v142_v13 = vpop.f32.mrb[1].mxu0 }
 0x118   :  { %v151_v14 = vadd.f32 %v142_v13, %v67_v10 }
 0x119   :  { %155 = vst.msk [vmem:[#allocation2 + $0x8] sm:$0xff] %vm58_vm0, %v152_v12 }
 0x11a   :  { %154 = vst.msk [vmem:[#allocation2] sm:$0xff] %vm58_vm0, %v151_v14 }
 0x120   :  { %v160_v16 = vld [vmem:[#allocation2 + $0x8] sm:$0xff] }
 0x121   :  { %v159_v17 = vld [vmem:[#allocation2] sm:$0xff]  ;;  %v169_v18 = vadd.f32 %v192_v15, %v160_v16 }
 0x122   :  { %v168_v19 = vadd.f32 %v192_v15, %v159_v17 }
 0x123   :  { %171 = vst.msk [vmem:[#allocation9 + $0x8] sm:$0xff] %vm58_vm0, %v169_v18 }
 0x124   :  { %170 = vst.msk [vmem:[#allocation9] sm:$0xff] %vm58_vm0, %v168_v19 }
 0x125   :  { %302 = shalt.err (!%p299_p0)
}
 0x126   :  { %s303_s28 = scalar_lea.hbm %s419_s3, 256 }
 0x127   :  { %p304_p1 = scmp.ne.s32.totalorder %s419_s3, %s303_s28  ;;  %p307_p2 = scmp.lt.u32.totalorder %s303_s28, %s419_s3 }
 0x129   :  { %p309_p3 = pnand %p307_p2, %p304_p1 }
 0x12b   :  { %312 = shalt.err (!%p309_p3)
}
 0x12c   :  { %183 = dma.vmem_to_hbm [thread:$0]  %s178_s22, 256, %s419_s3, [#allocation5], %s321_s24, %s321_s24, %s322_s25  }
 0x12d   :  { %317 = dma.done.wait [#allocation5], 256  }
 0x12e   :  { %318 = vsyncadd [#allocation5], 4294967040 }
 0x12f   :  { %187 = vsyncpa [#allocation4], 1 }
 0x130   :  { %188 = vsyncpa [#allocation7], 1 }
 0x131   :  { %189 = vsyncpa [#allocation5], 1 }

// kernel: multi_head_attention.4
= control target key start
LH: loop header
LB: loop body
LE: loop exit
PB: predicated region body
PF: predicated region fallthrough
CT: control target
= control target key end

     0   :  { %7 = vsyncpa [#allocation6], 0  ;;  %s1905_s0 = inlined_call_operand.hbm [shape: f32[2,8,96], index: 0, kind: input, shape index: {}, may-alias: {0,1}]   ;;  %s1906_s1 = inlined_call_operand.hbm [shape: f32[2,8,96], index: 1, kind: input, shape index: {}, may-alias: {0,1}]   ;;  %s1907_s2 = inlined_call_operand.hbm [shape: f32[2,4,8,8], index: 2, kind: output, shape index: {}]  }
   0x1   :  { %9 = vsyncpa [#allocation6 + $0x1], 0 }
   0x2   :  { %10 = vsyncpa [#allocation9], 0 }
   0x3   :  { %12 = vsyncpa [#allocation9 + $0x1], 0 }
   0x4   :  { %13 = vsyncpa [#allocation7], 0 }
   0x5   :  { %15 = vsyncpa [#allocation7 + $0x1], 0  ;;  %s1566_s9 = smov 0   ;;  %s1568_s10 = smov 0  }
   0x6   :  { %s1570_s11 = smov 0   ;;  %s1572_s12 = smov 0  }
   0x7   :  { %s1574_s13 = smov 0   ;;  %s1576_s14 = smov 0  }
   0x8 LB: > { %s1187_s15 = sadd.s32 4294967295, %s1529_s14   ;;  %s1188_s16 = sadd.s32 4294967294, %s1529_s14   ;;  %s1529_s14 = sphi %s1576_s14, %s21_s14   ;;  %s1525_s13 = sphi %s1574_s13, %s1927_s13   ;;  %s1521_s12 = sphi %s1572_s12, %s1926_s12   ;;  %s1517_s11 = sphi %s1570_s11, %s1925_s11   ;;  %s1513_s10 = sphi %s1568_s10, %s1924_s10   ;;  %s1509_s9 = sphi %s1566_s9, %s1923_s9  }
   0x9   : > { %s40_s17 = sadd.s32 1, %s1525_s13  ;;  %s49_s18 = sadd.s32 1, %s1517_s11 }
   0xa   : > { %p42_p0 = scmp.ge.s32.totalorder %s40_s17, 2  ;;  %p56_p1 = scmp.ne.s32.totalorder %s1517_s11, %s1513_s10 }
   0xb   : > { %p57_p2 = scmp.eq.s32.totalorder %s1529_s14, 0  ;;  %p62_p3 = scmp.ne.s32.totalorder %s1513_s10, %s1509_s9 }
   0xc   : > { %s1929_s17 = smov (%p42_p0, %s40_s17), 0  ;;  %p63_p5 = scmp.eq.s32.totalorder %s1187_s15, 0 }
   0xd   : > { %p1607_p4 = por %p57_p2, %p56_p1  ;;  %s44_s20 = ssub.s32 %s1525_s13, %s1929_s17 }
   0xe   : > { %p116_p6 = scmp.eq.s32.totalorder %s1187_s15, 1  ;;  %p47_p7 = scmp.eq.s32.totalorder %s44_s20, 0 }
   0xf   : > { %p1613_p8 = por %p63_p5, %p62_p3  ;;  %p122_p10 = scmp.eq.s32.totalorder %s1188_s16, 1 }
  0x10   : > { %p1617_p9 = por %p116_p6, %p56_p1  ;;  %p1290_p13 = scmp.lt.s32.totalorder %s1529_s14, 2 }
  0x11   : > { %s1911_s21 = scalar_select %p1613_p8, 1, 0 }
  0x12   : > { %s1912_s22 = scalar_select %p1617_p9, 1, 0 }
  0x13   : > { %s1622_s23 = scalar_select %p47_p7, %s1517_s11, %s49_s18  }
  0x14   : > { %p1624_p11 = por %p122_p10, %p62_p3  ;;  %s1631_s25 = sand.u32 1, %s1517_s11  }
  0x15   : > { %s1191_s26 = sshll.u32 %s1631_s25, 3  ;;  %s1192_s27 = sshll.u32 %s1525_s13, 7 }
  0x16   : > { %s1913_s24 = scalar_select %p1624_p11, 1, 0 }
  0x17   : > { %s1640_s30 = scalar_lea.hbm %s1905_s0, %s1192_s27  ;;  %s146_s3 = scalar_lea.vmem [#allocation5], %s1191_s26 }
  0x18   : > { %s154_s4 = sshll.u32 %s146_s3, 4  ;;  %p1648_p0 = pnand %p1290_p13, %p1607_p4  ;;  %s1644_s4 = int_to_ptr.vmem [resolvable:$true] %s154_s4 }
  0x19   : > { %s143_s6 = scalar_lea.sflag [#allocation6], %s1631_s25  ;;  %s1383_s7 = scalar_lea.hbm %s1640_s30, 128 }
  0x1a   : > { %p1384_p3 = scmp.ne.s32.totalorder %s1640_s30, %s1383_s7  ;;  %p1385_p5 = pneg %p1648_p0 }
  0x1b   : > { %s1388_s16 = scalar_lea.hbm %s1905_s0, 256  ;;  %p1389_p4 = scmp.lt.u32.totalorder %s1640_s30, %s1905_s0 }
  0x1c   : > { %p1386_p6 = pnand %p1385_p5, %p1384_p3  ;;  %p1390_p10 = scmp.lt.u32.totalorder %s1388_s16, %s1383_s7 }
  0x1d   : > { %p1392_p12 = scmp.lt.u32.totalorder %s1383_s7, %s1640_s30 }
  0x1e   : > { %p1387_p7 = pneg %p1386_p6  ;;  %p1391_p13 = por %p1390_p10, %p1389_p4 }
  0x20   : > { %p1393_p1 = por %p1392_p12, %p1391_p13 }
  0x22   : > { %p1394_p2 = pnand %p1393_p1, %p1387_p7 }
  0x24   : > { %1397 = shalt.err (!%p1394_p2)
}
  0x25   : > { %s1398_s20 = scalar_lea.vmem %s1644_s4, 128  ;;  %s1531_s28 = smov [#allocation5]  }
  0x26   : > { %p1399_p3 = scmp.ne.s32.totalorder %s1644_s4, %s1398_s20  ;;  %s1403_s29 = sshll.u32 %s1531_s28, 4  ;;  %s1404_s29 = int_to_ptr.vmem [resolvable:$false] %s1403_s29 }
  0x27   : > { %s1405_s3 = scalar_lea.vmem %s1404_s29, 256  ;;  %p1406_p9 = scmp.lt.s32.totalorder %s1644_s4, %s1404_s29 }
  0x28   : > { %p1401_p6 = pnand %p1399_p3, %p1385_p5  ;;  %p1407_p4 = scmp.lt.s32.totalorder %s1405_s3, %s1398_s20 }
  0x2a   : > { %p1402_p11 = pneg %p1401_p6  ;;  %p1408_p10 = por %p1407_p4, %p1406_p9 }
  0x2c   : > { %p1409_p12 = pnand %p1408_p10, %p1402_p11 }
  0x2e   : > { %1412 = shalt.err (!%p1409_p12)
}
  0x2f   : > { %1282 = dma.hbm_to_vmem [thread:$0]  (!%p1648_p0), %s1640_s30, 128, %s1644_s4, %s143_s6  }
  0x30   : > { %p1915_p1 = scmp.lt.s32.totalorder %s1529_s14, 3  ;;  %p1916_p2 = scmp.ge.s32.totalorder %s1529_s14, 1 }
  0x31   : > { %s1693_s16 = scalar_lea.hbm %s1906_s1, %s1192_s27  ;;  %s165_s18 = scalar_lea.vmem [#allocation8], %s1191_s26 }
  0x32   : > { %p1684_p7 = pnand %p1916_p2, %p1915_p1  ;;  %s173_s19 = sshll.u32 %s165_s18, 4  ;;  %s174_s19 = int_to_ptr.vmem [resolvable:$true] %s173_s19 }
  0x33   : > { %s162_s30 = scalar_lea.sflag [#allocation9], %s1631_s25  ;;  %s1413_s4 = scalar_lea.hbm %s1693_s16, 128 }
  0x34   : > { %s1917_s7 = scalar_select %p1684_p7, 1, 0 }
  0x35   : > { %p1414_p9 = scmp.ne.s32.totalorder %s1693_s16, %s1413_s4  ;;  %s1418_s27 = scalar_lea.hbm %s1906_s1, 256 }
  0x36   : > { %p1419_p3 = scmp.lt.u32.totalorder %s1693_s16, %s1906_s1  ;;  %p1420_p6 = scmp.lt.u32.totalorder %s1418_s27, %s1413_s4 }
  0x37   : > { %p1416_p11 = pnand %p1414_p9, %p1385_p5  ;;  %p1422_p10 = scmp.lt.u32.totalorder %s1413_s4, %s1693_s16 }
  0x38   : > { %p1421_p4 = por %p1420_p6, %p1419_p3 }
  0x39   : > { %p1417_p13 = pneg %p1416_p11 }
  0x3a   : > { %p1423_p12 = por %p1422_p10, %p1421_p4 }
  0x3c   : > { %p1424_p1 = pnand %p1423_p12, %p1417_p13 }
  0x3e   : > { %1427 = shalt.err (!%p1424_p1)
}
  0x3f   : > { %s1428_s25 = scalar_lea.vmem %s174_s19, 128  ;;  %s1532_s26 = smov [#allocation8]  }
  0x40   : > { %p1429_p2 = scmp.ne.s32.totalorder %s174_s19, %s1428_s25  ;;  %s1433_s3 = sshll.u32 %s1532_s26, 4  ;;  %s1434_s3 = int_to_ptr.vmem [resolvable:$false] %s1433_s3 }
  0x41   : > { %s1435_s8 = scalar_lea.vmem %s1434_s3, 256  ;;  %p1436_p8 = scmp.lt.s32.totalorder %s174_s19, %s1434_s3 }
  0x42   : > { %p1431_p9 = pnand %p1429_p2, %p1385_p5  ;;  %p1437_p7 = scmp.lt.s32.totalorder %s1435_s8, %s1428_s25 }
  0x44   : > { %p1432_p11 = pneg %p1431_p9  ;;  %p1438_p3 = por %p1437_p7, %p1436_p8 }
  0x46   : > { %p1439_p6 = pnand %p1438_p3, %p1432_p11 }
  0x48   : > { %1442 = shalt.err (!%p1439_p6)
}
  0x49   : > { %1285 = dma.hbm_to_vmem [thread:$0]  (!%p1648_p0), %s1693_s16, 128, %s174_s19, %s162_s30  }
  0x4a   : > { %p1918_p13 = scmp.ne.s32.totalorder %s1917_s7, 0 }
  0x4b   : > { %s1720_s15 = sand.u32 (!%p1918_p13), 1, %s1513_s10   ;;  %p1919_p5 = scmp.ne.s32.totalorder (!%p1918_p13), %s1911_s21, 0 }
  0x4c   : > { %182 = sbr.rel (%p1918_p13) target bundleno = 1529 (0x5f9), region = 28  ;;  %s1196_s18 = sshll.u32 (!%p1918_p13), %s1720_s15, 3 }
  0x4d   : > { %s185_s4 = scalar_lea.sflag (!%p1918_p13), [#allocation6], %s1720_s15  ;;  %s188_s6 = scalar_lea.vmem (!%p1918_p13), [#allocation5], %s1196_s18 }
  0x53   : > { %1496 = dma.done.wait (%p1919_p5), %s185_s4, 128  }
  0x54   : > { %1498 = vsyncadd (%p1919_p5), %s185_s4, 4294967168  ;;  %s194_s5 = scalar_lea.sflag [#allocation9], %s1720_s15  ;;  %s197_s16 = scalar_lea.vmem [#allocation8], %s1196_s18 }
  0x55   : > { %1500 = dma.done.wait (%p1919_p5), %s194_s5, 128  }
  0x56   : > { %1502 = vsyncadd (%p1919_p5), %s194_s5, 4294967168  ;;  %vm236_vm0 = vcmask 64512   ;;  %v1533_v0 = vmov 0.0   ;;  %vm1534_vm1 = vmmov 0   ;;  %v1747_v1 = vld [vmem:[%s197_s16] sm:$0xff]  ;;  %s1535_s21 = smov 120  }
  0x57   : > { %1233 = vmatprep.subr.mxu0 %v1533_v0  ;;  %237 = vst.msk [vmem:[#allocation4] sm:$0xff] %vm236_vm0, %v1533_v0  ;;  %238 = vst.msk [vmem:[#allocation4 + $0x8] sm:$0xff] %vm236_vm0, %v1533_v0  ;;  %1235 = vmatprep.mubr.msk.f32.mxu0 %vm1534_vm1, %v1533_v0  ;;  %v241_v2 = vld [vmem:[%s188_s6] sm:$0xff]  ;;  %vm227_vm2 = vcmask 7168   ;;  %v1536_v5 = vmov -inf   ;;  %v1537_v9 = vmov 0  }
  0x58   : > { %239 = vst.msk [vmem:[#allocation4 + $0x10] sm:$0xff] %vm236_vm0, %v1533_v0  ;;  %240 = vst.msk [vmem:[#allocation4 + $0x18] sm:$0xff] %vm236_vm0, %v1533_v0  ;;  %1238 = vmatprep.subr.mxu1 %v1533_v0  ;;  %1240 = vmatprep.mubr.msk.f32.mxu1 %vm1534_vm1, %v1533_v0  ;;  %v243_v4 = vmul.f32 0.35355338, %v241_v2  ;;  %s1538_s7 = smov 112   ;;  %s1539_s19 = smov 96  }
  0x59   : > { %245 = vrot.lane.b32.xlu0 %v1747_v1, %s1535_s21  ;;  %228 = vst.msk [vmem:[#allocation2] sm:$0xff] %vm227_vm2, %v1536_v5  ;;  %229 = vst.msk [vmem:[#allocation2 + $0x8] sm:$0xff] %vm227_vm2, %v1536_v5  ;;  %1357 = vset.pattern.permute.xlu1 %v1537_v9  ;;  %s1540_s30 = smov 104   ;;  %s1541_s20 = smov 72  }
  0x5a   : > { %230 = vst.msk [vmem:[#allocation2 + $0x10] sm:$0xff] %vm227_vm2, %v1536_v5  ;;  %231 = vst.msk [vmem:[#allocation2 + $0x18] sm:$0xff] %vm227_vm2, %v1536_v5  ;;  %1358 = vset.pattern.permute.xlu0 %v1537_v9  ;;  %s1542_s27 = smov 80   ;;  %s1543_s28 = smov 48  }
  0x5b   : > { %232 = vst.msk [vmem:[#allocation3] sm:$0xff] %vm227_vm2, %v1533_v0  ;;  %233 = vst.msk [vmem:[#allocation3 + $0x8] sm:$0xff] %vm227_vm2, %v1533_v0  ;;  %s1544_s29 = smov 56   ;;  %s1545_s25 = smov 88  }
  0x5c   : > { %234 = vst.msk [vmem:[#allocation3 + $0x10] sm:$0xff] %vm227_vm2, %v1533_v0  ;;  %235 = vst.msk [vmem:[#allocation3 + $0x18] sm:$0xff] %vm227_vm2, %v1533_v0  ;;  %s1546_s26 = smov 40   ;;  %s1547_s3 = smov 64  }
  0x5d   : > { %s1198_s8 = sshll.u32 %s1720_s15, 5  ;;  %s1216_s6 = sshll.u32 %s1521_s12, 9 }
  0x5e   : > { %s1836_s18 = scalar_lea.vmem [#allocation10], %s1198_s8  ;;  %s1854_s21 = scalar_lea.hbm %s1907_s2, %s1216_s6 }
  0x5f   : > { %s1076_s4 = sshll.u32 %s1836_s18, 4  ;;  %p1920_p0 = scmp.ne.s32.totalorder %s1912_s22, 0  ;;  %s1849_s4 = int_to_ptr.vmem [resolvable:$true] %s1076_s4 }
  0x60   : > { %v1768_v10 = vld [vmem:[#allocation2] sm:$0xff]  ;;  %v517_v36 = vld [vmem:[#allocation2 + $0x8] sm:$0xff]  ;;  %s1548_s12 = smov [#allocation10]  }
  0x61   : > { %v1803_v39 = vld [vmem:[#allocation2 + $0x10] sm:$0xff]  ;;  %v907_v44 = vld [vmem:[#allocation2 + $0x18] sm:$0xff] }
  0xcb   : > { %v246_v3 = vpop.permute.xlu0 %245 }
  0xcc   : > { %1234 = vmatpush3.xpose.msk.msra.mxu0 %vm236_vm0, %v246_v3 }
  0xcd   : > { %1248 = vmatprep.subr.mxu0 %v1533_v0 }
  0xcf   : > { %1236 = vmatmul.mubr.msk.f32.vlgmr.msra.gmra.mrb[0].mxu0 %vm236_vm0, %v243_v4 }
  0xd0   : > { %1250 = vmatprep.mubr.msk.f32.mxu0 %vm1534_vm1, %v1533_v0 }
 0x1a2   : > { %v319_v6 = vpop.f32.mrb[0].mxu0 }
 0x1a3   : > { %v1237_v7 = vpop.f32.mrb[1].mxu0  ;;  %v325_v8 = vsel %vm236_vm0, %v319_v6, -inf }
 0x1a4   : > { %326 = vmax.xlane.f32.xlu0 %v325_v8 }
 0x231   : > { %v327_v11 = vpop.xlane.xlu0 %326 }
 0x232   : > { %v1771_v12 = vmax.f32 %v1768_v10, %v327_v11 }
 0x234   : > { %v329_v13 = vsub.f32 %v1768_v10, %v1771_v12  ;;  %432 = vst.msk [vmem:[#allocation2] sm:$0xff] %vm227_vm2, %v1771_v12  ;;  %334 = vperm.xlu1 %1357, %v1771_v12   ;;  %v519_v12 = vld [vmem:[#allocation3 + $0x8] sm:$0xff] }
 0x238   : > { %347 = vrot.lane.b32.xlu1 %v1747_v1, %s1538_s7  ;;  %s1062_s7 = scalar_lea.sflag [#allocation7], %s1720_s15 }
 0x23c   : > { %440 = vrot.lane.b32.xlu1 %v1747_v1, %s1539_s19  ;;  %s1443_s19 = scalar_lea.vmem %s1849_s4, 512 }
 0x23d   : > { %p1444_p8 = scmp.ne.s32.totalorder %s1849_s4, %s1443_s19 }
 0x23f   : > { %p1445_p7 = pnand %p1444_p8, %p1920_p0 }
 0x240   : > { %437 = vrot.lane.b32.xlu1 %v243_v4, %s1540_s30  ;;  %s1447_s30 = sshll.u32 %s1548_s12, 4  ;;  %s1448_s30 = int_to_ptr.vmem [resolvable:$false] %s1447_s30 }
 0x241   : > { %p1446_p4 = pneg %p1445_p7  ;;  %p1450_p10 = scmp.lt.s32.totalorder %s1849_s4, %s1448_s30 }
 0x244   : > { %635 = vrot.lane.b32.xlu1 %v1747_v1, %s1541_s20  ;;  %s1449_s20 = scalar_lea.vmem %s1448_s30, 1024 }
 0x245   : > { %p1451_p12 = scmp.lt.s32.totalorder %s1449_s20, %s1443_s19 }
 0x247   : > { %p1452_p1 = por %p1451_p12, %p1450_p10 }
 0x248   : > { %632 = vrot.lane.b32.xlu1 %v243_v4, %s1542_s27 }
 0x249   : > { %p1453_p2 = pnand %p1452_p1, %p1446_p4 }
 0x24c   : > { %830 = vrot.lane.b32.xlu1 %v1747_v1, %s1543_s28 }
 0x250   : > { %827 = vrot.lane.b32.xlu1 %v243_v4, %s1544_s29 }
 0x2b3   : > { %v335_v14 = vpop.permute.xlu1 %334 }
 0x2b4   : > { %v337_v15 = vsub.f32 %v319_v6, %v335_v14  ;;  %v330_v6 = vmul.f32 1.442695, %v329_v13  ;;  %v324_v14 = vld [vmem:[#allocation3] sm:$0xff] }
 0x2b6   : > { %v338_v16 = vmul.f32 1.442695, %v337_v15 }
 0x2b7   : > { %v348_v17 = vpop.permute.xlu1 %347 }
 0x2b8   : > { %1359 = vpow2.f32 %v338_v16  ;;  %1239 = vmatpush3.msra.mxu1 %v348_v17 }
 0x2b9   : > { %1243 = vmatprep.subr.mxu1 %v1533_v0 }
 0x2bb   : > { %v441_v18 = vpop.permute.xlu1 %440 }
 0x2bf   : > { %v438_v19 = vpop.permute.xlu1 %437 }
 0x2c2   : > { %v1360_v20 = vpop.eup %1359 }
 0x2c3   : > { %1241 = vmatmul.mubr.msk.f32.vlgmr.msra.gmra.mrb[0].mxu1 %vm236_vm0, %v1360_v20  ;;  %v636_v21 = vpop.permute.xlu1 %635  ;;  %v341_v48 = vsel %vm236_vm0, %v1360_v20, 0.0  ;;  %v714_v20 = vld [vmem:[#allocation3 + $0x10] sm:$0xff] }
 0x2c4   : > { %1244 = vmatpush3.xpose.msk.msra.mxu1 %vm236_vm0, %v441_v18  ;;  %1245 = vmatprep.mubr.msk.f32.mxu1 %vm1534_vm1, %v1533_v0 }
 0x2c5   : > { %1253 = vmatprep.subr.mxu1 %v1533_v0 }
 0x2c7   : > { %1246 = vmatmul.mubr.msk.f32.vlgmr.msra.gmra.mrb[2].mxu1 %vm236_vm0, %v438_v19  ;;  %v633_v22 = vpop.permute.xlu1 %632 }
 0x2c8   : > { %1254 = vmatpush3.xpose.msk.msra.mxu1 %vm236_vm0, %v636_v21  ;;  %1255 = vmatprep.mubr.msk.f32.mxu1 %vm1534_vm1, %v1533_v0 }
 0x2c9   : > { %1263 = vmatprep.subr.mxu1 %v1533_v0 }
 0x2cb   : > { %1256 = vmatmul.mubr.msk.f32.vlgmr.msra.gmra.mrb[4].mxu1 %vm236_vm0, %v633_v22  ;;  %v831_v23 = vpop.permute.xlu1 %830 }
 0x2cc   : > { %1264 = vmatpush3.xpose.msk.msra.mxu1 %vm236_vm0, %v831_v23  ;;  %1265 = vmatprep.mubr.msk.f32.mxu1 %vm1534_vm1, %v1533_v0 }
 0x2cf   : > { %v828_v24 = vpop.permute.xlu1 %827 }
 0x2d0   : > { %1266 = vmatmul.mubr.msk.f32.vlgmr.msra.gmra.mrb[6].mxu1 %vm236_vm0, %v828_v24 }
 0x396   : > { %v1798_v25 = vpop.f32.mrb[0].mxu1 }
 0x397   : > { %v1242_v26 = vpop.f32.mrb[1].mxu1 }
 0x398   : > { %v909_v26 = vld [vmem:[#allocation3 + $0x18] sm:$0xff] }
 0x39a   : > { %v512_v27 = vpop.f32.mrb[2].mxu1 }
 0x39b   : > { %v1247_v28 = vpop.f32.mrb[3].mxu1  ;;  %v520_v29 = vsel %vm236_vm0, %v512_v27, -inf }
 0x39c   : > { %521 = vmax.xlane.f32.xlu1 %v520_v29 }
 0x39e   : > { %v707_v30 = vpop.f32.mrb[4].mxu1 }
 0x39f   : > { %v1257_v31 = vpop.f32.mrb[5].mxu1  ;;  %v715_v32 = vsel %vm236_vm0, %v707_v30, -inf }
 0x3a0   : > { %716 = vmax.xlane.f32.xlu0 %v715_v32  ;;  %v423_v32 = vld [vmem:[#allocation4] sm:$0xff] }
 0x3a3   : > { %v902_v33 = vpop.f32.mrb[6].mxu1 }
 0x3a4   : > { %v1267_v34 = vpop.f32.mrb[7].mxu1  ;;  %v910_v35 = vsel %vm236_vm0, %v902_v33, -inf }
 0x3a5   : > { %911 = vmax.xlane.f32.xlu0 %v910_v35 }
 0x429   : > { %v522_v37 = vpop.xlane.xlu1 %521 }
 0x42a   : > { %v523_v38 = vmax.f32 %v517_v36, %v522_v37 }
 0x42c   : > { %v524_v40 = vsub.f32 %v517_v36, %v523_v38  ;;  %627 = vst.msk [vmem:[#allocation2 + $0x8] sm:$0xff] %vm227_vm2, %v523_v38  ;;  %529 = vperm.xlu0 %1358, %v523_v38  }
 0x42d   : > { %v717_v41 = vpop.xlane.xlu0 %716 }
 0x42e   : > { %v718_v42 = vmax.f32 %v1803_v39, %v717_v41  ;;  %v525_v2 = vmul.f32 1.442695, %v524_v40 }
 0x430   : > { %v719_v43 = vsub.f32 %v1803_v39, %v718_v42  ;;  %822 = vst.msk [vmem:[#allocation2 + $0x10] sm:$0xff] %vm227_vm2, %v718_v42  ;;  %724 = vperm.xlu1 %1357, %v718_v42   ;;  %541 = vrot.lane.b32.xlu0 %v1747_v1, %s1545_s25 }
 0x432   : > { %v912_v45 = vpop.xlane.xlu0 %911  ;;  %v720_v8 = vmul.f32 1.442695, %v719_v43 }
 0x433   : > { %v913_v46 = vmax.f32 %v907_v44, %v912_v45 }
 0x434   : > { %931 = vrot.lane.b32.xlu0 %v1747_v1, %s1546_s26 }
 0x435   : > { %v914_v47 = vsub.f32 %v907_v44, %v913_v46  ;;  %1017 = vst.msk [vmem:[#allocation2 + $0x18] sm:$0xff] %vm227_vm2, %v913_v46  ;;  %919 = vperm.xlu1 %1357, %v913_v46   ;;  %v813_v46 = vld [vmem:[#allocation4 + $0x10] sm:$0xff] }
 0x437   : > { %v915_v5 = vmul.f32 1.442695, %v914_v47 }
 0x439   : > { %736 = vrot.lane.b32.xlu1 %v1747_v1, %s1547_s3 }
 0x45d   : > { %342 = vadd.xlane.f32.xlu1 %v341_v48 }
 0x4ab   : > { %v530_v49 = vpop.permute.xlu0 %529 }
 0x4ac   : > { %v532_v50 = vsub.f32 %v512_v27, %v530_v49 }
 0x4ae   : > { %v533_v51 = vmul.f32 1.442695, %v532_v50 }
 0x4af   : > { %v725_v52 = vpop.permute.xlu1 %724  ;;  %v542_v53 = vpop.permute.xlu0 %541 }
 0x4b0   : > { %1361 = vpow2.f32 %v533_v51  ;;  %v727_v54 = vsub.f32 %v707_v30, %v725_v52  ;;  %1249 = vmatpush3.msra.mxu0 %v542_v53  ;;  %v1008_v53 = vld [vmem:[#allocation4 + $0x18] sm:$0xff] }
 0x4b1   : > { %1258 = vmatprep.subr.mxu0 %v1533_v0 }
 0x4b2   : > { %v728_v55 = vmul.f32 1.442695, %v727_v54 }
 0x4b3   : > { %v932_v62 = vpop.permute.xlu0 %931 }
 0x4b4   : > { %1363 = vpow2.f32 %v728_v55  ;;  %v920_v56 = vpop.permute.xlu1 %919 }
 0x4b5   : > { %v922_v57 = vsub.f32 %v902_v33, %v920_v56 }
 0x4b7   : > { %v923_v58 = vmul.f32 1.442695, %v922_v57 }
 0x4b8   : > { %v737_v59 = vpop.permute.xlu1 %736 }
 0x4b9   : > { %1365 = vpow2.f32 %v923_v58 }
 0x4ba   : > { %v1362_v60 = vpop.eup %1361  ;;  %1367 = vpow2.f32 %v525_v2 }
 0x4bb   : > { %1251 = vmatmul.mubr.msk.f32.vlgmr.msra.gmra.mrb[2].mxu0 %vm236_vm0, %v1362_v60  ;;  %v536_v61 = vsel %vm236_vm0, %v1362_v60, 0.0  ;;  %1369 = vpow2.f32 %v915_v5 }
 0x4bc   : > { %537 = vadd.xlane.f32.xlu0 %v536_v61  ;;  %1259 = vmatpush3.msra.mxu0 %v737_v59  ;;  %1371 = vpow2.f32 %v330_v6 }
 0x4bd   : > { %1260 = vmatprep.mubr.msk.f32.mxu0 %vm1534_vm1, %v1533_v0  ;;  %1268 = vmatprep.subr.mxu0 %v1533_v0  ;;  %1373 = vpow2.f32 %v720_v8 }
 0x4be   : > { %v1364_v63 = vpop.eup %1363 }
 0x4bf   : > { %1261 = vmatmul.mubr.msk.f32.vlgmr.msra.gmra.mrb[4].mxu0 %vm236_vm0, %v1364_v63  ;;  %v731_v1 = vsel %vm236_vm0, %v1364_v63, 0.0 }
 0x4c0   : > { %732 = vadd.xlane.f32.xlu1 %v731_v1  ;;  %1269 = vmatpush3.msra.mxu0 %v932_v62 }
 0x4c1   : > { %1270 = vmatprep.mubr.msk.f32.mxu0 %vm1534_vm1, %v1533_v0 }
 0x4c3   : > { %v1366_v3 = vpop.eup %1365 }
 0x4c4   : > { %1271 = vmatmul.mubr.msk.f32.vlgmr.msra.gmra.mrb[6].mxu0 %vm236_vm0, %v1366_v3  ;;  %v926_v4 = vsel %vm236_vm0, %v1366_v3, 0.0  ;;  %v1368_v7 = vpop.eup %1367 }
 0x4c5   : > { %927 = vadd.xlane.f32.xlu0 %v926_v4  ;;  %v1370_v9 = vpop.eup %1369  ;;  %v535_v13 = vmul.f32 %v1368_v7, %v519_v12 }
 0x4c6   : > { %v1372_v0 = vpop.eup %1371  ;;  %v925_v27 = vmul.f32 %v1370_v9, %v909_v26 }
 0x4c7   : > { %v1374_v11 = vpop.eup %1373  ;;  %v340_v15 = vmul.f32 %v1372_v0, %v324_v14 }
 0x4c8   : > { %v730_v22 = vmul.f32 %v1374_v11, %v714_v20 }
 0x4d1   : > { %621 = vperm.xlu1 %1357, %v1368_v7  }
 0x4d5   : > { %1011 = vperm.xlu1 %1357, %v1370_v9  }
 0x4db   : > { %426 = vperm.xlu0 %1358, %v1372_v0  }
 0x4df   : > { %816 = vperm.xlu0 %1358, %v1374_v11  }
 0x4ea   : > { %v343_v16 = vpop.xlane.xlu1 %342 }
 0x4eb   : > { %v344_v17 = vadd.f32 %v343_v16, %v340_v15 }
 0x4ed   : > { %346 = vst.msk [vmem:[#allocation3] sm:$0xff] %vm227_vm2, %v344_v17 }
 0x4f4   : > { %v1021_v18 = vld [vmem:[#allocation3] sm:$0xff] }
 0x4f5   : > { %1375 = vrcp.f32 %v1021_v18 }
 0x4ff   : > { %v1376_v10 = vpop.eup %1375 }
 0x500   : > { %1035 = vperm.xlu1 %1357, %v1376_v10  }
 0x549   : > { %v538_v19 = vpop.xlane.xlu0 %537 }
 0x54a   : > { %v539_v21 = vadd.f32 %v538_v19, %v535_v13 }
 0x54c   : > { %540 = vst.msk [vmem:[#allocation3 + $0x8] sm:$0xff] %vm227_vm2, %v539_v21 }
 0x54d   : > { %v733_v23 = vpop.xlane.xlu1 %732 }
 0x54e   : > { %v734_v24 = vadd.f32 %v733_v23, %v730_v22 }
 0x550   : > { %735 = vst.msk [vmem:[#allocation3 + $0x10] sm:$0xff] %vm227_vm2, %v734_v24 }
 0x551   : > { %v622_v40 = vpop.permute.xlu1 %621 }
 0x552   : > { %v928_v28 = vpop.xlane.xlu0 %927 }
 0x553   : > { %v929_v29 = vadd.f32 %v928_v28, %v925_v27  ;;  %v1022_v30 = vld [vmem:[#allocation3 + $0x8] sm:$0xff] }
 0x554   : > { %1377 = vrcp.f32 %v1022_v30 }
 0x555   : > { %930 = vst.msk [vmem:[#allocation3 + $0x18] sm:$0xff] %vm227_vm2, %v929_v29  ;;  %v1012_v41 = vpop.permute.xlu1 %1011 }
 0x556   : > { %v1014_v56 = vmul.f32 %v1012_v41, %v1008_v53 }
 0x557   : > { %v1023_v31 = vld [vmem:[#allocation3 + $0x10] sm:$0xff] }
 0x558   : > { %1379 = vrcp.f32 %v1023_v31 }
 0x55a   : > { %v427_v33 = vpop.permute.xlu0 %426 }
 0x55b   : > { %v429_v34 = vmul.f32 %v427_v33, %v423_v32 }
 0x55c   : > { %v1024_v35 = vld [vmem:[#allocation3 + $0x18] sm:$0xff] }
 0x55d   : > { %v430_v36 = vadd.f32 %v429_v34, %v1798_v25  ;;  %1381 = vrcp.f32 %v1024_v35  ;;  %v618_v25 = vld [vmem:[#allocation4 + $0x8] sm:$0xff] }
 0x55e   : > { %v1378_v37 = vpop.eup %1377  ;;  %v624_v45 = vmul.f32 %v622_v40, %v618_v25  ;;  %v817_v47 = vpop.permute.xlu0 %816 }
 0x55f   : > { %431 = vst.msk [vmem:[#allocation4] sm:$0xff] %vm236_vm0, %v430_v36  ;;  %1040 = vperm.xlu0 %1358, %v1378_v37   ;;  %v819_v51 = vmul.f32 %v817_v47, %v813_v46 }
 0x562   : > { %v1380_v38 = vpop.eup %1379 }
 0x563   : > { %1045 = vperm.xlu1 %1357, %v1380_v38  }
 0x566   : > { %v1029_v42 = vld [vmem:[#allocation4] sm:$0xff] }
 0x567   : > { %v1382_v39 = vpop.eup %1381 }
 0x568   : > { %1050 = vperm.xlu0 %1358, %v1382_v39  }
 0x57f   : > { %v1036_v43 = vpop.permute.xlu1 %1035 }
 0x580   : > { %v1053_v44 = vmul.f32 %v1036_v43, %v1029_v42 }
 0x582   : > { %1057 = vst.msk [vmem:[%s1836_s18] sm:$0xff] %vm236_vm0, %v1053_v44 }
 0x58e   : > { %v613_v48 = vpop.f32.mrb[2].mxu0 }
 0x58f   : > { %v625_v49 = vadd.f32 %v624_v45, %v613_v48  ;;  %v1252_v50 = vpop.f32.mrb[3].mxu0 }
 0x591   : > { %626 = vst.msk [vmem:[#allocation4 + $0x8] sm:$0xff] %vm236_vm0, %v625_v49 }
 0x592   : > { %v808_v52 = vpop.f32.mrb[4].mxu0 }
 0x593   : > { %v820_v54 = vadd.f32 %v819_v51, %v808_v52  ;;  %v1262_v55 = vpop.f32.mrb[5].mxu0 }
 0x595   : > { %821 = vst.msk [vmem:[#allocation4 + $0x10] sm:$0xff] %vm236_vm0, %v820_v54 }
 0x597   : > { %v1003_v57 = vpop.f32.mrb[6].mxu0 }
 0x598   : > { %v1015_v58 = vadd.f32 %v1014_v56, %v1003_v57  ;;  %v1272_v59 = vpop.f32.mrb[7].mxu0  ;;  %v1030_v60 = vld [vmem:[#allocation4 + $0x8] sm:$0xff] }
 0x59a   : > { %1016 = vst.msk [vmem:[#allocation4 + $0x18] sm:$0xff] %vm236_vm0, %v1015_v58 }
 0x59c   : > { %v1031_v63 = vld [vmem:[#allocation4 + $0x10] sm:$0xff] }
 0x5a1   : > { %v1032_v3 = vld [vmem:[#allocation4 + $0x18] sm:$0xff] }
 0x5de   : > { %v1041_v61 = vpop.permute.xlu0 %1040 }
 0x5df   : > { %v1054_v62 = vmul.f32 %v1041_v61, %v1030_v60 }
 0x5e1   : > { %1058 = vst.msk [vmem:[%s1836_s18 + $0x8] sm:$0xff] %vm236_vm0, %v1054_v62 }
 0x5e2   : > { %v1046_v1 = vpop.permute.xlu1 %1045 }
 0x5e3   : > { %v1055_v2 = vmul.f32 %v1046_v1, %v1031_v63 }
 0x5e5   : > { %1059 = vst.msk [vmem:[%s1836_s18 + $0x10] sm:$0xff] %vm236_vm0, %v1055_v2 }
 0x5e7   : > { %v1051_v4 = vpop.permute.xlu0 %1050 }
 0x5e8   : > { %v1056_v5 = vmul.f32 %v1051_v4, %v1032_v3 }
 0x5ea   : > { %1060 = vst.msk [vmem:[%s1836_s18 + $0x18] sm:$0xff] %vm236_vm0, %v1056_v5 }
 0x5eb   : > { %1456 = shalt.err (!%p1453_p2)
}
 0x5ec   : > { %s1457_s27 = scalar_lea.hbm %s1854_s21, 512  ;;  %s1461_s25 = scalar_lea.hbm %s1907_s2, 1024 }
 0x5ed   : > { %p1458_p9 = scmp.ne.s32.totalorder %s1854_s21, %s1457_s27  ;;  %p1462_p6 = scmp.lt.u32.totalorder %s1854_s21, %s1907_s2 }
 0x5ee   : > { %p1463_p13 = scmp.lt.u32.totalorder %s1461_s25, %s1457_s27  ;;  %p1465_p8 = scmp.lt.u32.totalorder %s1457_s27, %s1854_s21 }
 0x5ef   : > { %p1459_p11 = pnand %p1458_p9, %p1920_p0 }
 0x5f0   : > { %p1464_p5 = por %p1463_p13, %p1462_p6 }
 0x5f1   : > { %p1460_p3 = pneg %p1459_p11 }
 0x5f2   : > { %p1466_p7 = por %p1465_p8, %p1464_p5 }
 0x5f4   : > { %p1467_p4 = pnand %p1466_p7, %p1460_p3 }
 0x5f6   : > { %1470 = shalt.err (!%p1467_p4)
}
 0x5f7   : > { %s1549_s8 = smov 128   ;;  %s1550_s18 = smov 8  }
 0x5f8   : > { %1277 = dma.vmem_to_hbm [thread:$0]  (%p1920_p0), %s1849_s4, 512, %s1854_s21, %s1062_s7, %s1549_s8, %s1549_s8, %s1550_s18  }
 0x5f9 PF: > { %s1091_s6 = sand.u32 1, %s1509_s9   ;;  %p1921_p10 = scmp.ne.s32.totalorder %s1913_s24, 0 }
 0x5fa   : > { %p1922_p12 = scmp.ge.s32.totalorder %s1529_s14, 2  ;;  %s1092_s5 = scalar_lea.sflag [#allocation7], %s1091_s6 }
 0x5fc   : > { %p1287_p1 = pnand %p1922_p12, %p1921_p10 }
 0x5fe   : > { %1504 = dma.done.wait (!%p1287_p1), %s1092_s5, 512  }
 0x5ff   : > { %1506 = vsyncadd (!%p1287_p1), %s1092_s5, 4294966784  ;;  %s21_s14 = sadd.s32 1, %s1529_s14   ;;  %s1923_s9 = smov %s1513_s10 }
 0x600   : > { %p18_p2 = scmp.ge.s32.totalorder %s21_s14, 4   ;;  %s1924_s10 = smov %s1517_s11 }
 0x601   : > { %s1925_s11 = smov %s1622_s23  ;;  %s1926_s12 = smov %s1525_s13 }
 0x602   : > { %s1927_s13 = smov %s1929_s17  ;;  %20 = sbr.rel (!%p18_p2) target bundleno = 8 (0x8), region = 103 }
 0x609   :  { %1097 = vsyncpa [#allocation6], 1 }
 0x60a   :  { %1099 = vsyncpa [#allocation6 + $0x1], 1 }
 0x60b   :  { %1100 = vsyncpa [#allocation9], 1 }
 0x60c   :  { %1102 = vsyncpa [#allocation9 + $0x1], 1 }
 0x60d   :  { %1103 = vsyncpa [#allocation7], 1 }
 0x60e   :  { %1105 = vsyncpa [#allocation7 + $0x1], 1 }

</bundles_post_ra>
